<compile_context>
chip_gen: v5e
topology: v5e:2x2
jax: 0.10.0
libtpu: 0.0.40
codegen_flags: <defaults>
</compile_context>

<pallas_src>
import functools
import math

import jax
import jax.numpy as jnp
from jax import lax
from jax.experimental import pallas as pl
from jax.experimental.pallas import tpu as pltpu  # noqa: F401  (kept for parity)


# ----------------------------------------------------------------------------
# Fused wavefront kernel: all LSTM layers + fc1 + tanh in one pallas_call.
# ----------------------------------------------------------------------------
def _netE_wavefront_kernel(L, T, B, H, ninp, out_lanes,
                           x_ref, h0_ref, c0_ref,
                           wih0f_ref, biasf_ref, wrec_ref, fcw_ref, fcb_ref,
                           out_ref):
    LH = L * H

    # Hoisted layer-0 input projection + per-layer biases, already in the fused
    # gate-major column order [ i(all layers) | f(...) | g(...) | o(...) ].
    gb = (jnp.dot(x_ref[...], wih0f_ref[...],
                  preferred_element_type=jnp.float32)
          + biasf_ref[...])                                    # (T*B, 4*LH)

    # Loop-invariant fused recurrent weight, read once.
    w_rec = wrec_ref[...]                                      # (LH, 4*LH)
    # TODO(synk): pltpu.matmul_push_rhs could keep w_rec resident in the MXU
    # weight registers across the unrolled steps.

    init_h = [h0_ref[l] for l in range(L)]
    init_c = [c0_ref[l] for l in range(L)]
    h_cat = jnp.concatenate(init_h, axis=-1)                   # (B, LH)
    c_cat = jnp.concatenate(init_c, axis=-1)                   # (B, LH)

    finals_h = [None] * L
    finals_c = [None] * L

    # Wavefront: step s advances layer l's time-(s-l) cell for all valid l.
    # Statically unrolled (T and L are small); switch to lax.fori_loop with
    # partial unroll if T grows.
    for s in range(T + L - 1):
        rb = min(s, T - 1)                                     # gb row block
        gates = gb[rb * B:(rb + 1) * B, :] + jnp.dot(
            h_cat, w_rec, preferred_element_type=jnp.float32)  # (B, 4*LH)

        # Full-width EUP passes on whole vregs; lane extracts only afterwards.
        if_blk = gates[:, :2 * LH]                             # [i|f] -> vreg 0
        go_blk = gates[:, 2 * LH:]                             # [g|o] -> vreg 1
        sig_if = jax.nn.sigmoid(if_blk)
        tnh_go = jnp.tanh(go_blk)
        sig_go = jax.nn.sigmoid(go_blk)
        i_cat = sig_if[:, :LH]
        f_cat = sig_if[:, LH:]
        g_cat = tnh_go[:, :LH]
        o_cat = sig_go[:, LH:]

        c_new = f_cat * c_cat + i_cat * g_cat                  # (B, LH)
        h_new = o_cat * jnp.tanh(c_new)                        # (B, LH)

        # Snapshot each layer's final state at its last valid step.
        for l in range(L):
            if s == l + T - 1:
                finals_h[l] = h_new[:, l * H:(l + 1) * H]
                finals_c[l] = c_new[:, l * H:(l + 1) * H]

        if s < L - 1:
            # Layers l > s have not started yet: keep their initial state.
            h_parts, c_parts = [], []
            for l in range(L):
                if l > s:
                    h_parts.append(init_h[l])
                    c_parts.append(init_c[l])
                else:
                    h_parts.append(h_new[:, l * H:(l + 1) * H])
                    c_parts.append(c_new[:, l * H:(l + 1) * H])
            h_cat = jnp.concatenate(h_parts, axis=-1)
            c_cat = jnp.concatenate(c_parts, axis=-1)
        else:
            h_cat, c_cat = h_new, c_new

    # TODO(synk): F.dropout on ques_feat[-1] is identity in eval mode; training
    # mode dropout not implemented.
    feat = jnp.tanh(jnp.dot(finals_h[L - 1], fcw_ref[...],
                            preferred_element_type=jnp.float32) + fcb_ref[...])

    # Single lane-dense packed output: [feat | h_n (all layers) | c_n | pad].
    parts = [feat] + finals_h + finals_c
    used = ninp + 2 * LH
    if out_lanes > used:
        parts.append(jnp.zeros((B, out_lanes - used), jnp.float32))
    out_ref[...] = jnp.concatenate(parts, axis=-1)


# ----------------------------------------------------------------------------
# One-time parameter preparation (hoisted out of the per-call wrapper).
# ----------------------------------------------------------------------------
def prepare_netE_params(params, ninp, nhid, nlayers):
    H, L = nhid, nlayers
    LH = L * H
    G = 4 * LH

    w_rec = jnp.zeros((LH, G), jnp.float32)     # fused recurrent (+ Wih_{l>=1})
    wih0_f = jnp.zeros((ninp, G), jnp.float32)  # layer-0 input proj, fused cols
    bias_f = jnp.zeros((1, G), jnp.float32)     # b_ih + b_hh, fused cols

    for l in range(L):
        w_ih, w_hh, b_ih, b_hh = params["lstm"][l]
        whh_t = jnp.transpose(w_hh)             # (H, 4H)
        wih_t = jnp.transpose(w_ih)             # (Din, 4H)
        b = b_ih + b_hh                         # (4H,)
        for g in range(4):
            col = slice(g * LH + l * H, g * LH + (l + 1) * H)
            w_rec = w_rec.at[l * H:(l + 1) * H, col].set(
                whh_t[:, g * H:(g + 1) * H])
            bias_f = bias_f.at[0, col].set(b[g * H:(g + 1) * H])
            if l == 0:
                wih0_f = wih0_f.at[:, col].set(wih_t[:, g * H:(g + 1) * H])
            else:
                # layer l's input is layer (l-1)'s hidden state
                w_rec = w_rec.at[(l - 1) * H:l * H, col].set(
                    wih_t[:, g * H:(g + 1) * H])

    return {
        "wih0_f": wih0_f,
        "bias_f": bias_f,
        "w_rec": w_rec,
        "fc_w_t": jnp.transpose(params["fc1_w"]),     # (H, ninp)
        "fc_b": params["fc1_b"].reshape(1, ninp),     # (1, ninp)
    }


# ----------------------------------------------------------------------------
# _netE forward (eval mode)
# ----------------------------------------------------------------------------
@jax.jit
def netE_forward(prep, emb, hidden):
    h0, c0 = hidden                       # each (nlayers, B, nhid)
    L, B, H = h0.shape
    T, _, ninp = emb.shape

    # Pad batch to a multiple of 8 sublanes (padded rows sliced off below).
    B_pad = max(8, ((B + 7) // 8) * 8)
    pad = B_pad - B
    x_p = jnp.pad(emb, ((0, 0), (0, pad), (0, 0))).reshape(T * B_pad, ninp)
    h0_p = jnp.pad(h0, ((0, 0), (0, pad), (0, 0)))
    c0_p = jnp.pad(c0, ((0, 0), (0, pad), (0, 0)))

    used = ninp + 2 * L * H
    out_lanes = max(128, ((used + 127) // 128) * 128)

    kernel = functools.partial(_netE_wavefront_kernel,
                               L, T, B_pad, H, ninp, out_lanes)

    packed = pl.pallas_call(
        kernel,
        out_shape=jax.ShapeDtypeStruct((B_pad, out_lanes), jnp.float32),
        in_specs=[
            pl.BlockSpec((T * B_pad, ninp), lambda: (0, 0)),
            pl.BlockSpec((L, B_pad, H), lambda: (0, 0, 0)),
            pl.BlockSpec((L, B_pad, H), lambda: (0, 0, 0)),
            pl.BlockSpec(prep["wih0_f"].shape, lambda: (0, 0)),
            pl.BlockSpec(prep["bias_f"].shape, lambda: (0, 0)),
            pl.BlockSpec(prep["w_rec"].shape, lambda: (0, 0)),
            pl.BlockSpec(prep["fc_w_t"].shape, lambda: (0, 0)),
            pl.BlockSpec(prep["fc_b"].shape, lambda: (0, 0)),
        ],
        out_specs=pl.BlockSpec((B_pad, out_lanes), lambda: (0, 0)),
    )(x_p, h0_p, c0_p, prep["wih0_f"], prep["bias_f"], prep["w_rec"],
      prep["fc_w_t"], prep["fc_b"])

    feat = packed[:B, :ninp]
    h_n = jnp.stack(
        [packed[:B, ninp + l * H: ninp + (l + 1) * H] for l in range(L)], 0)
    c_n = jnp.stack(
        [packed[:B, ninp + L * H + l * H: ninp + L * H + (l + 1) * H]
         for l in range(L)], 0)
    return feat, (h_n, c_n)


# ----------------------------------------------------------------------------
# Pure-JAX reference (for correctness check)
# ----------------------------------------------------------------------------
def netE_forward_ref(params, emb, hidden):
    h0, c0 = hidden
    nlayers = h0.shape[0]
    x = emb
    h_n, c_n = [], []
    for layer in range(nlayers):
        w_ih, w_hh, b_ih, b_hh = params["lstm"][layer]
        H = w_hh.shape[1]

        def step(carry, x_t):
            h, c = carry
            gates = x_t @ w_ih.T + b_ih + h @ w_hh.T + b_hh
            i = jax.nn.sigmoid(gates[:, 0 * H:1 * H])
            f = jax.nn.sigmoid(gates[:, 1 * H:2 * H])
            g = jnp.tanh(gates[:, 2 * H:3 * H])
            o = jax.nn.sigmoid(gates[:, 3 * H:4 * H])
            c2 = f * c + i * g
            h2 = o * jnp.tanh(c2)
            return (h2, c2), h2

        (h_last, c_last), ys = lax.scan(step, (h0[layer], c0[layer]), x)
        x = ys
        h_n.append(h_last)
        c_n.append(c_last)
    feat = jnp.tanh(x[-1] @ params["fc1_w"].T + params["fc1_b"])
    return feat, (jnp.stack(h_n, 0), jnp.stack(c_n, 0))


# ----------------------------------------------------------------------------
# Deterministic parameter init (PyTorch-style uniform(-1/sqrt(H), 1/sqrt(H)))
# ----------------------------------------------------------------------------
def init_params(key, ninp, nhid, nlayers):
    bound = 1.0 / math.sqrt(nhid)
    params = {"lstm": []}
    for layer in range(nlayers):
        din = ninp if layer == 0 else nhid
        key, k1, k2, k3, k4 = jax.random.split(key, 5)
        w_ih = jax.random.uniform(k1, (4 * nhid, din), jnp.float32, -bound, bound)
        w_hh = jax.random.uniform(k2, (4 * nhid, nhid), jnp.float32, -bound, bound)
        b_ih = jax.random.uniform(k3, (4 * nhid,), jnp.float32, -bound, bound)
        b_hh = jax.random.uniform(k4, (4 * nhid,), jnp.float32, -bound, bound)
        params["lstm"].append((w_ih, w_hh, b_ih, b_hh))
    key, k5, k6 = jax.random.split(key, 3)
    fc_bound = 1.0 / math.sqrt(nhid)
    params["fc1_w"] = jax.random.uniform(k5, (ninp, nhid), jnp.float32,
                                         -fc_bound, fc_bound)
    params["fc1_b"] = jax.random.uniform(k6, (ninp,), jnp.float32,
                                         -fc_bound, fc_bound)
    return params


if __name__ == "__main__":
    # small shapes implied by the module's forward
    T, B = 8, 2          # seq len, batch
    ninp, nhid, nlayers = 32, 32, 2

    key = jax.random.PRNGKey(0)
    key, kp, ke, kh, kc = jax.random.split(key, 5)
    params = init_params(kp, ninp, nhid, nlayers)
    prep = prepare_netE_params(params, ninp, nhid, nlayers)   # one-time prep

    emb = jax.random.normal(ke, (T, B, ninp), jnp.float32)
    # Non-zero initial hidden state to exercise the full state-handling path
    # (init_hidden() in the module would pass zeros).
    h0 = 0.5 * jax.random.normal(kh, (nlayers, B, nhid), jnp.float32)
    c0 = 0.5 * jax.random.normal(kc, (nlayers, B, nhid), jnp.float32)

    encoder_feat, (h_n, c_n) = netE_forward(prep, emb, (h0, c0))
    jax.block_until_ready(encoder_feat)
    jax.block_until_ready(h_n)
    jax.block_until_ready(c_n)

    # correctness vs pure-JAX reference
    ref_feat, (ref_h, ref_c) = netE_forward_ref(params, emb, (h0, c0))
    assert jnp.allclose(encoder_feat, ref_feat, atol=1e-5, rtol=1e-5)
    assert jnp.allclose(h_n, ref_h, atol=1e-5, rtol=1e-5)
    assert jnp.allclose(c_n, ref_c, atol=1e-5, rtol=1e-5)

    print("KERNEL_OK")
</pallas_src>

<mosaic_0001>
module attributes {stable_mosaic.version = 11 : i64} {
  func.func @_netE_wavefront_kernel(%arg0: memref<64x32xf32, #tpu.memory_space<vmem>>, %arg1: memref<2x8x32xf32, #tpu.memory_space<vmem>>, %arg2: memref<2x8x32xf32, #tpu.memory_space<vmem>>, %arg3: memref<32x256xf32, #tpu.memory_space<vmem>>, %arg4: memref<1x256xf32, #tpu.memory_space<vmem>>, %arg5: memref<64x256xf32, #tpu.memory_space<vmem>>, %arg6: memref<32x32xf32, #tpu.memory_space<vmem>>, %arg7: memref<1x32xf32, #tpu.memory_space<vmem>>, %arg8: memref<8x256xf32, #tpu.memory_space<vmem>>) attributes {dimension_semantics = [], scalar_prefetch = 0 : i64, scratch_operands = 0 : i64, tpu.core_type = #tpu.core_type<tc>} {
    %c0 = arith.constant 0 : index
    %c0_0 = arith.constant 0 : index
    %0 = vector.load %arg0[%c0, %c0_0] : memref<64x32xf32, #tpu.memory_space<vmem>>, vector<64x32xf32>
    %c0_1 = arith.constant 0 : index
    %c0_2 = arith.constant 0 : index
    %1 = vector.load %arg3[%c0_1, %c0_2] : memref<32x256xf32, #tpu.memory_space<vmem>>, vector<32x256xf32>
    %cst = arith.constant dense<0.000000e+00> : vector<64x256xf32>
    %2 = tpu.matmul %0, %1, %cst {dimension_numbers = #tpu.dot_dimension_numbers<[1], [0], [0], [1], [0, 0, 1, 1], [], []>} : vector<64x32xf32>, vector<32x256xf32>, vector<64x256xf32> -> vector<64x256xf32>
    %c0_3 = arith.constant 0 : index
    %c0_4 = arith.constant 0 : index
    %3 = vector.load %arg4[%c0_3, %c0_4] : memref<1x256xf32, #tpu.memory_space<vmem>>, vector<1x256xf32>
    %4 = vector.broadcast %3 : vector<1x256xf32> to vector<64x256xf32>
    %5 = arith.addf %2, %4 : vector<64x256xf32>
    %c0_5 = arith.constant 0 : index
    %c0_6 = arith.constant 0 : index
    %6 = vector.load %arg5[%c0_5, %c0_6] : memref<64x256xf32, #tpu.memory_space<vmem>>, vector<64x256xf32>
    %c0_7 = arith.constant 0 : index
    %c0_8 = arith.constant 0 : index
    %c0_9 = arith.constant 0 : index
    %7 = vector.load %arg1[%c0_7, %c0_8, %c0_9] : memref<2x8x32xf32, #tpu.memory_space<vmem>>, vector<1x8x32xf32>
    %8 = vector.shape_cast %7 : vector<1x8x32xf32> to vector<8x32xf32>
    %c1 = arith.constant 1 : index
    %c0_10 = arith.constant 0 : index
    %c0_11 = arith.constant 0 : index
    %9 = vector.load %arg1[%c1, %c0_10, %c0_11] : memref<2x8x32xf32, #tpu.memory_space<vmem>>, vector<1x8x32xf32>
    %10 = vector.shape_cast %9 : vector<1x8x32xf32> to vector<8x32xf32>
    %c0_12 = arith.constant 0 : index
    %c0_13 = arith.constant 0 : index
    %c0_14 = arith.constant 0 : index
    %11 = vector.load %arg2[%c0_12, %c0_13, %c0_14] : memref<2x8x32xf32, #tpu.memory_space<vmem>>, vector<1x8x32xf32>
    %12 = vector.shape_cast %11 : vector<1x8x32xf32> to vector<8x32xf32>
    %c1_15 = arith.constant 1 : index
    %c0_16 = arith.constant 0 : index
    %c0_17 = arith.constant 0 : index
    %13 = vector.load %arg2[%c1_15, %c0_16, %c0_17] : memref<2x8x32xf32, #tpu.memory_space<vmem>>, vector<1x8x32xf32>
    %14 = vector.shape_cast %13 : vector<1x8x32xf32> to vector<8x32xf32>
    %15 = tpu.concatenate %8, %10 in 1 : vector<8x32xf32>, vector<8x32xf32> -> vector<8x64xf32>
    %16 = tpu.concatenate %12, %14 in 1 : vector<8x32xf32>, vector<8x32xf32> -> vector<8x64xf32>
    %17 = vector.extract_strided_slice %5 {offsets = [0, 0], sizes = [8, 256], strides = [1, 1]} : vector<64x256xf32> to vector<8x256xf32>
    %cst_18 = arith.constant dense<0.000000e+00> : vector<8x256xf32>
    %18 = tpu.matmul %15, %6, %cst_18 {dimension_numbers = #tpu.dot_dimension_numbers<[1], [0], [0], [1], [0, 0, 1, 1], [], []>} : vector<8x64xf32>, vector<64x256xf32>, vector<8x256xf32> -> vector<8x256xf32>
    %19 = arith.addf %17, %18 : vector<8x256xf32>
    %20 = vector.extract_strided_slice %19 {offsets = [0, 0], sizes = [8, 128], strides = [1, 1]} : vector<8x256xf32> to vector<8x128xf32>
    %21 = vector.extract_strided_slice %19 {offsets = [0, 128], sizes = [8, 128], strides = [1, 1]} : vector<8x256xf32> to vector<8x128xf32>
    %22 = arith.negf %20 : vector<8x128xf32>
    %23 = math.exp %22 : vector<8x128xf32>
    %cst_19 = arith.constant 1.000000e+00 : f32
    %24 = vector.broadcast %cst_19 : f32 to vector<8x128xf32>
    %25 = arith.addf %24, %23 : vector<8x128xf32>
    %26 = arith.divf %24, %25 : vector<8x128xf32>
    %27 = math.tanh %21 : vector<8x128xf32>
    %28 = arith.negf %21 : vector<8x128xf32>
    %29 = math.exp %28 : vector<8x128xf32>
    %cst_20 = arith.constant 1.000000e+00 : f32
    %30 = vector.broadcast %cst_20 : f32 to vector<8x128xf32>
    %31 = arith.addf %30, %29 : vector<8x128xf32>
    %32 = arith.divf %30, %31 : vector<8x128xf32>
    %33 = vector.extract_strided_slice %26 {offsets = [0, 0], sizes = [8, 64], strides = [1, 1]} : vector<8x128xf32> to vector<8x64xf32>
    %34 = vector.extract_strided_slice %26 {offsets = [0, 64], sizes = [8, 64], strides = [1, 1]} : vector<8x128xf32> to vector<8x64xf32>
    %35 = vector.extract_strided_slice %27 {offsets = [0, 0], sizes = [8, 64], strides = [1, 1]} : vector<8x128xf32> to vector<8x64xf32>
    %36 = vector.extract_strided_slice %32 {offsets = [0, 64], sizes = [8, 64], strides = [1, 1]} : vector<8x128xf32> to vector<8x64xf32>
    %37 = arith.mulf %34, %16 : vector<8x64xf32>
    %38 = arith.mulf %33, %35 : vector<8x64xf32>
    %39 = arith.addf %37, %38 : vector<8x64xf32>
    %40 = math.tanh %39 : vector<8x64xf32>
    %41 = arith.mulf %36, %40 : vector<8x64xf32>
    %42 = vector.extract_strided_slice %41 {offsets = [0, 0], sizes = [8, 32], strides = [1, 1]} : vector<8x64xf32> to vector<8x32xf32>
    %43 = vector.extract_strided_slice %39 {offsets = [0, 0], sizes = [8, 32], strides = [1, 1]} : vector<8x64xf32> to vector<8x32xf32>
    %44 = tpu.concatenate %42, %10 in 1 : vector<8x32xf32>, vector<8x32xf32> -> vector<8x64xf32>
    %45 = tpu.concatenate %43, %14 in 1 : vector<8x32xf32>, vector<8x32xf32> -> vector<8x64xf32>
    %46 = vector.extract_strided_slice %5 {offsets = [8, 0], sizes = [8, 256], strides = [1, 1]} : vector<64x256xf32> to vector<8x256xf32>
    %cst_21 = arith.constant dense<0.000000e+00> : vector<8x256xf32>
    %47 = tpu.matmul %44, %6, %cst_21 {dimension_numbers = #tpu.dot_dimension_numbers<[1], [0], [0], [1], [0, 0, 1, 1], [], []>} : vector<8x64xf32>, vector<64x256xf32>, vector<8x256xf32> -> vector<8x256xf32>
    %48 = arith.addf %46, %47 : vector<8x256xf32>
    %49 = vector.extract_strided_slice %48 {offsets = [0, 0], sizes = [8, 128], strides = [1, 1]} : vector<8x256xf32> to vector<8x128xf32>
    %50 = vector.extract_strided_slice %48 {offsets = [0, 128], sizes = [8, 128], strides = [1, 1]} : vector<8x256xf32> to vector<8x128xf32>
    %51 = arith.negf %49 : vector<8x128xf32>
    %52 = math.exp %51 : vector<8x128xf32>
    %cst_22 = arith.constant 1.000000e+00 : f32
    %53 = vector.broadcast %cst_22 : f32 to vector<8x128xf32>
    %54 = arith.addf %53, %52 : vector<8x128xf32>
    %55 = arith.divf %53, %54 : vector<8x128xf32>
    %56 = math.tanh %50 : vector<8x128xf32>
    %57 = arith.negf %50 : vector<8x128xf32>
    %58 = math.exp %57 : vector<8x128xf32>
    %cst_23 = arith.constant 1.000000e+00 : f32
    %59 = vector.broadcast %cst_23 : f32 to vector<8x128xf32>
    %60 = arith.addf %59, %58 : vector<8x128xf32>
    %61 = arith.divf %59, %60 : vector<8x128xf32>
    %62 = vector.extract_strided_slice %55 {offsets = [0, 0], sizes = [8, 64], strides = [1, 1]} : vector<8x128xf32> to vector<8x64xf32>
    %63 = vector.extract_strided_slice %55 {offsets = [0, 64], sizes = [8, 64], strides = [1, 1]} : vector<8x128xf32> to vector<8x64xf32>
    %64 = vector.extract_strided_slice %56 {offsets = [0, 0], sizes = [8, 64], strides = [1, 1]} : vector<8x128xf32> to vector<8x64xf32>
    %65 = vector.extract_strided_slice %61 {offsets = [0, 64], sizes = [8, 64], strides = [1, 1]} : vector<8x128xf32> to vector<8x64xf32>
    %66 = arith.mulf %63, %45 : vector<8x64xf32>
    %67 = arith.mulf %62, %64 : vector<8x64xf32>
    %68 = arith.addf %66, %67 : vector<8x64xf32>
    %69 = math.tanh %68 : vector<8x64xf32>
    %70 = arith.mulf %65, %69 : vector<8x64xf32>
    %71 = vector.extract_strided_slice %5 {offsets = [16, 0], sizes = [8, 256], strides = [1, 1]} : vector<64x256xf32> to vector<8x256xf32>
    %cst_24 = arith.constant dense<0.000000e+00> : vector<8x256xf32>
    %72 = tpu.matmul %70, %6, %cst_24 {dimension_numbers = #tpu.dot_dimension_numbers<[1], [0], [0], [1], [0, 0, 1, 1], [], []>} : vector<8x64xf32>, vector<64x256xf32>, vector<8x256xf32> -> vector<8x256xf32>
    %73 = arith.addf %71, %72 : vector<8x256xf32>
    %74 = vector.extract_strided_slice %73 {offsets = [0, 0], sizes = [8, 128], strides = [1, 1]} : vector<8x256xf32> to vector<8x128xf32>
    %75 = vector.extract_strided_slice %73 {offsets = [0, 128], sizes = [8, 128], strides = [1, 1]} : vector<8x256xf32> to vector<8x128xf32>
    %76 = arith.negf %74 : vector<8x128xf32>
    %77 = math.exp %76 : vector<8x128xf32>
    %cst_25 = arith.constant 1.000000e+00 : f32
    %78 = vector.broadcast %cst_25 : f32 to vector<8x128xf32>
    %79 = arith.addf %78, %77 : vector<8x128xf32>
    %80 = arith.divf %78, %79 : vector<8x128xf32>
    %81 = math.tanh %75 : vector<8x128xf32>
    %82 = arith.negf %75 : vector<8x128xf32>
    %83 = math.exp %82 : vector<8x128xf32>
    %cst_26 = arith.constant 1.000000e+00 : f32
    %84 = vector.broadcast %cst_26 : f32 to vector<8x128xf32>
    %85 = arith.addf %84, %83 : vector<8x128xf32>
    %86 = arith.divf %84, %85 : vector<8x128xf32>
    %87 = vector.extract_strided_slice %80 {offsets = [0, 0], sizes = [8, 64], strides = [1, 1]} : vector<8x128xf32> to vector<8x64xf32>
    %88 = vector.extract_strided_slice %80 {offsets = [0, 64], sizes = [8, 64], strides = [1, 1]} : vector<8x128xf32> to vector<8x64xf32>
    %89 = vector.extract_strided_slice %81 {offsets = [0, 0], sizes = [8, 64], strides = [1, 1]} : vector<8x128xf32> to vector<8x64xf32>
    %90 = vector.extract_strided_slice %86 {offsets = [0, 64], sizes = [8, 64], strides = [1, 1]} : vector<8x128xf32> to vector<8x64xf32>
    %91 = arith.mulf %88, %68 : vector<8x64xf32>
    %92 = arith.mulf %87, %89 : vector<8x64xf32>
    %93 = arith.addf %91, %92 : vector<8x64xf32>
    %94 = math.tanh %93 : vector<8x64xf32>
    %95 = arith.mulf %90, %94 : vector<8x64xf32>
    %96 = vector.extract_strided_slice %5 {offsets = [24, 0], sizes = [8, 256], strides = [1, 1]} : vector<64x256xf32> to vector<8x256xf32>
    %cst_27 = arith.constant dense<0.000000e+00> : vector<8x256xf32>
    %97 = tpu.matmul %95, %6, %cst_27 {dimension_numbers = #tpu.dot_dimension_numbers<[1], [0], [0], [1], [0, 0, 1, 1], [], []>} : vector<8x64xf32>, vector<64x256xf32>, vector<8x256xf32> -> vector<8x256xf32>
    %98 = arith.addf %96, %97 : vector<8x256xf32>
    %99 = vector.extract_strided_slice %98 {offsets = [0, 0], sizes = [8, 128], strides = [1, 1]} : vector<8x256xf32> to vector<8x128xf32>
    %100 = vector.extract_strided_slice %98 {offsets = [0, 128], sizes = [8, 128], strides = [1, 1]} : vector<8x256xf32> to vector<8x128xf32>
    %101 = arith.negf %99 : vector<8x128xf32>
    %102 = math.exp %101 : vector<8x128xf32>
    %cst_28 = arith.constant 1.000000e+00 : f32
    %103 = vector.broadcast %cst_28 : f32 to vector<8x128xf32>
    %104 = arith.addf %103, %102 : vector<8x128xf32>
    %105 = arith.divf %103, %104 : vector<8x128xf32>
    %106 = math.tanh %100 : vector<8x128xf32>
    %107 = arith.negf %100 : vector<8x128xf32>
    %108 = math.exp %107 : vector<8x128xf32>
    %cst_29 = arith.constant 1.000000e+00 : f32
    %109 = vector.broadcast %cst_29 : f32 to vector<8x128xf32>
    %110 = arith.addf %109, %108 : vector<8x128xf32>
    %111 = arith.divf %109, %110 : vector<8x128xf32>
    %112 = vector.extract_strided_slice %105 {offsets = [0, 0], sizes = [8, 64], strides = [1, 1]} : vector<8x128xf32> to vector<8x64xf32>
    %113 = vector.extract_strided_slice %105 {offsets = [0, 64], sizes = [8, 64], strides = [1, 1]} : vector<8x128xf32> to vector<8x64xf32>
    %114 = vector.extract_strided_slice %106 {offsets = [0, 0], sizes = [8, 64], strides = [1, 1]} : vector<8x128xf32> to vector<8x64xf32>
    %115 = vector.extract_strided_slice %111 {offsets = [0, 64], sizes = [8, 64], strides = [1, 1]} : vector<8x128xf32> to vector<8x64xf32>
    %116 = arith.mulf %113, %93 : vector<8x64xf32>
    %117 = arith.mulf %112, %114 : vector<8x64xf32>
    %118 = arith.addf %116, %117 : vector<8x64xf32>
    %119 = math.tanh %118 : vector<8x64xf32>
    %120 = arith.mulf %115, %119 : vector<8x64xf32>
    %121 = vector.extract_strided_slice %5 {offsets = [32, 0], sizes = [8, 256], strides = [1, 1]} : vector<64x256xf32> to vector<8x256xf32>
    %cst_30 = arith.constant dense<0.000000e+00> : vector<8x256xf32>
    %122 = tpu.matmul %120, %6, %cst_30 {dimension_numbers = #tpu.dot_dimension_numbers<[1], [0], [0], [1], [0, 0, 1, 1], [], []>} : vector<8x64xf32>, vector<64x256xf32>, vector<8x256xf32> -> vector<8x256xf32>
    %123 = arith.addf %121, %122 : vector<8x256xf32>
    %124 = vector.extract_strided_slice %123 {offsets = [0, 0], sizes = [8, 128], strides = [1, 1]} : vector<8x256xf32> to vector<8x128xf32>
    %125 = vector.extract_strided_slice %123 {offsets = [0, 128], sizes = [8, 128], strides = [1, 1]} : vector<8x256xf32> to vector<8x128xf32>
    %126 = arith.negf %124 : vector<8x128xf32>
    %127 = math.exp %126 : vector<8x128xf32>
    %cst_31 = arith.constant 1.000000e+00 : f32
    %128 = vector.broadcast %cst_31 : f32 to vector<8x128xf32>
    %129 = arith.addf %128, %127 : vector<8x128xf32>
    %130 = arith.divf %128, %129 : vector<8x128xf32>
    %131 = math.tanh %125 : vector<8x128xf32>
    %132 = arith.negf %125 : vector<8x128xf32>
    %133 = math.exp %132 : vector<8x128xf32>
    %cst_32 = arith.constant 1.000000e+00 : f32
    %134 = vector.broadcast %cst_32 : f32 to vector<8x128xf32>
    %135 = arith.addf %134, %133 : vector<8x128xf32>
    %136 = arith.divf %134, %135 : vector<8x128xf32>
    %137 = vector.extract_strided_slice %130 {offsets = [0, 0], sizes = [8, 64], strides = [1, 1]} : vector<8x128xf32> to vector<8x64xf32>
    %138 = vector.extract_strided_slice %130 {offsets = [0, 64], sizes = [8, 64], strides = [1, 1]} : vector<8x128xf32> to vector<8x64xf32>
    %139 = vector.extract_strided_slice %131 {offsets = [0, 0], sizes = [8, 64], strides = [1, 1]} : vector<8x128xf32> to vector<8x64xf32>
    %140 = vector.extract_strided_slice %136 {offsets = [0, 64], sizes = [8, 64], strides = [1, 1]} : vector<8x128xf32> to vector<8x64xf32>
    %141 = arith.mulf %138, %118 : vector<8x64xf32>
    %142 = arith.mulf %137, %139 : vector<8x64xf32>
    %143 = arith.addf %141, %142 : vector<8x64xf32>
    %144 = math.tanh %143 : vector<8x64xf32>
    %145 = arith.mulf %140, %144 : vector<8x64xf32>
    %146 = vector.extract_strided_slice %5 {offsets = [40, 0], sizes = [8, 256], strides = [1, 1]} : vector<64x256xf32> to vector<8x256xf32>
    %cst_33 = arith.constant dense<0.000000e+00> : vector<8x256xf32>
    %147 = tpu.matmul %145, %6, %cst_33 {dimension_numbers = #tpu.dot_dimension_numbers<[1], [0], [0], [1], [0, 0, 1, 1], [], []>} : vector<8x64xf32>, vector<64x256xf32>, vector<8x256xf32> -> vector<8x256xf32>
    %148 = arith.addf %146, %147 : vector<8x256xf32>
    %149 = vector.extract_strided_slice %148 {offsets = [0, 0], sizes = [8, 128], strides = [1, 1]} : vector<8x256xf32> to vector<8x128xf32>
    %150 = vector.extract_strided_slice %148 {offsets = [0, 128], sizes = [8, 128], strides = [1, 1]} : vector<8x256xf32> to vector<8x128xf32>
    %151 = arith.negf %149 : vector<8x128xf32>
    %152 = math.exp %151 : vector<8x128xf32>
    %cst_34 = arith.constant 1.000000e+00 : f32
    %153 = vector.broadcast %cst_34 : f32 to vector<8x128xf32>
    %154 = arith.addf %153, %152 : vector<8x128xf32>
    %155 = arith.divf %153, %154 : vector<8x128xf32>
    %156 = math.tanh %150 : vector<8x128xf32>
    %157 = arith.negf %150 : vector<8x128xf32>
    %158 = math.exp %157 : vector<8x128xf32>
    %cst_35 = arith.constant 1.000000e+00 : f32
    %159 = vector.broadcast %cst_35 : f32 to vector<8x128xf32>
    %160 = arith.addf %159, %158 : vector<8x128xf32>
    %161 = arith.divf %159, %160 : vector<8x128xf32>
    %162 = vector.extract_strided_slice %155 {offsets = [0, 0], sizes = [8, 64], strides = [1, 1]} : vector<8x128xf32> to vector<8x64xf32>
    %163 = vector.extract_strided_slice %155 {offsets = [0, 64], sizes = [8, 64], strides = [1, 1]} : vector<8x128xf32> to vector<8x64xf32>
    %164 = vector.extract_strided_slice %156 {offsets = [0, 0], sizes = [8, 64], strides = [1, 1]} : vector<8x128xf32> to vector<8x64xf32>
    %165 = vector.extract_strided_slice %161 {offsets = [0, 64], sizes = [8, 64], strides = [1, 1]} : vector<8x128xf32> to vector<8x64xf32>
    %166 = arith.mulf %163, %143 : vector<8x64xf32>
    %167 = arith.mulf %162, %164 : vector<8x64xf32>
    %168 = arith.addf %166, %167 : vector<8x64xf32>
    %169 = math.tanh %168 : vector<8x64xf32>
    %170 = arith.mulf %165, %169 : vector<8x64xf32>
    %171 = vector.extract_strided_slice %5 {offsets = [48, 0], sizes = [8, 256], strides = [1, 1]} : vector<64x256xf32> to vector<8x256xf32>
    %cst_36 = arith.constant dense<0.000000e+00> : vector<8x256xf32>
    %172 = tpu.matmul %170, %6, %cst_36 {dimension_numbers = #tpu.dot_dimension_numbers<[1], [0], [0], [1], [0, 0, 1, 1], [], []>} : vector<8x64xf32>, vector<64x256xf32>, vector<8x256xf32> -> vector<8x256xf32>
    %173 = arith.addf %171, %172 : vector<8x256xf32>
    %174 = vector.extract_strided_slice %173 {offsets = [0, 0], sizes = [8, 128], strides = [1, 1]} : vector<8x256xf32> to vector<8x128xf32>
    %175 = vector.extract_strided_slice %173 {offsets = [0, 128], sizes = [8, 128], strides = [1, 1]} : vector<8x256xf32> to vector<8x128xf32>
    %176 = arith.negf %174 : vector<8x128xf32>
    %177 = math.exp %176 : vector<8x128xf32>
    %cst_37 = arith.constant 1.000000e+00 : f32
    %178 = vector.broadcast %cst_37 : f32 to vector<8x128xf32>
    %179 = arith.addf %178, %177 : vector<8x128xf32>
    %180 = arith.divf %178, %179 : vector<8x128xf32>
    %181 = math.tanh %175 : vector<8x128xf32>
    %182 = arith.negf %175 : vector<8x128xf32>
    %183 = math.exp %182 : vector<8x128xf32>
    %cst_38 = arith.constant 1.000000e+00 : f32
    %184 = vector.broadcast %cst_38 : f32 to vector<8x128xf32>
    %185 = arith.addf %184, %183 : vector<8x128xf32>
    %186 = arith.divf %184, %185 : vector<8x128xf32>
    %187 = vector.extract_strided_slice %180 {offsets = [0, 0], sizes = [8, 64], strides = [1, 1]} : vector<8x128xf32> to vector<8x64xf32>
    %188 = vector.extract_strided_slice %180 {offsets = [0, 64], sizes = [8, 64], strides = [1, 1]} : vector<8x128xf32> to vector<8x64xf32>
    %189 = vector.extract_strided_slice %181 {offsets = [0, 0], sizes = [8, 64], strides = [1, 1]} : vector<8x128xf32> to vector<8x64xf32>
    %190 = vector.extract_strided_slice %186 {offsets = [0, 64], sizes = [8, 64], strides = [1, 1]} : vector<8x128xf32> to vector<8x64xf32>
    %191 = arith.mulf %188, %168 : vector<8x64xf32>
    %192 = arith.mulf %187, %189 : vector<8x64xf32>
    %193 = arith.addf %191, %192 : vector<8x64xf32>
    %194 = math.tanh %193 : vector<8x64xf32>
    %195 = arith.mulf %190, %194 : vector<8x64xf32>
    %196 = vector.extract_strided_slice %5 {offsets = [56, 0], sizes = [8, 256], strides = [1, 1]} : vector<64x256xf32> to vector<8x256xf32>
    %cst_39 = arith.constant dense<0.000000e+00> : vector<8x256xf32>
    %197 = tpu.matmul %195, %6, %cst_39 {dimension_numbers = #tpu.dot_dimension_numbers<[1], [0], [0], [1], [0, 0, 1, 1], [], []>} : vector<8x64xf32>, vector<64x256xf32>, vector<8x256xf32> -> vector<8x256xf32>
    %198 = arith.addf %196, %197 : vector<8x256xf32>
    %199 = vector.extract_strided_slice %198 {offsets = [0, 0], sizes = [8, 128], strides = [1, 1]} : vector<8x256xf32> to vector<8x128xf32>
    %200 = vector.extract_strided_slice %198 {offsets = [0, 128], sizes = [8, 128], strides = [1, 1]} : vector<8x256xf32> to vector<8x128xf32>
    %201 = arith.negf %199 : vector<8x128xf32>
    %202 = math.exp %201 : vector<8x128xf32>
    %cst_40 = arith.constant 1.000000e+00 : f32
    %203 = vector.broadcast %cst_40 : f32 to vector<8x128xf32>
    %204 = arith.addf %203, %202 : vector<8x128xf32>
    %205 = arith.divf %203, %204 : vector<8x128xf32>
    %206 = math.tanh %200 : vector<8x128xf32>
    %207 = arith.negf %200 : vector<8x128xf32>
    %208 = math.exp %207 : vector<8x128xf32>
    %cst_41 = arith.constant 1.000000e+00 : f32
    %209 = vector.broadcast %cst_41 : f32 to vector<8x128xf32>
    %210 = arith.addf %209, %208 : vector<8x128xf32>
    %211 = arith.divf %209, %210 : vector<8x128xf32>
    %212 = vector.extract_strided_slice %205 {offsets = [0, 0], sizes = [8, 64], strides = [1, 1]} : vector<8x128xf32> to vector<8x64xf32>
    %213 = vector.extract_strided_slice %205 {offsets = [0, 64], sizes = [8, 64], strides = [1, 1]} : vector<8x128xf32> to vector<8x64xf32>
    %214 = vector.extract_strided_slice %206 {offsets = [0, 0], sizes = [8, 64], strides = [1, 1]} : vector<8x128xf32> to vector<8x64xf32>
    %215 = vector.extract_strided_slice %211 {offsets = [0, 64], sizes = [8, 64], strides = [1, 1]} : vector<8x128xf32> to vector<8x64xf32>
    %216 = arith.mulf %213, %193 : vector<8x64xf32>
    %217 = arith.mulf %212, %214 : vector<8x64xf32>
    %218 = arith.addf %216, %217 : vector<8x64xf32>
    %219 = math.tanh %218 : vector<8x64xf32>
    %220 = arith.mulf %215, %219 : vector<8x64xf32>
    %221 = vector.extract_strided_slice %220 {offsets = [0, 0], sizes = [8, 32], strides = [1, 1]} : vector<8x64xf32> to vector<8x32xf32>
    %222 = vector.extract_strided_slice %218 {offsets = [0, 0], sizes = [8, 32], strides = [1, 1]} : vector<8x64xf32> to vector<8x32xf32>
    %223 = vector.extract_strided_slice %5 {offsets = [56, 0], sizes = [8, 256], strides = [1, 1]} : vector<64x256xf32> to vector<8x256xf32>
    %cst_42 = arith.constant dense<0.000000e+00> : vector<8x256xf32>
    %224 = tpu.matmul %220, %6, %cst_42 {dimension_numbers = #tpu.dot_dimension_numbers<[1], [0], [0], [1], [0, 0, 1, 1], [], []>} : vector<8x64xf32>, vector<64x256xf32>, vector<8x256xf32> -> vector<8x256xf32>
    %225 = arith.addf %223, %224 : vector<8x256xf32>
    %226 = vector.extract_strided_slice %225 {offsets = [0, 0], sizes = [8, 128], strides = [1, 1]} : vector<8x256xf32> to vector<8x128xf32>
    %227 = vector.extract_strided_slice %225 {offsets = [0, 128], sizes = [8, 128], strides = [1, 1]} : vector<8x256xf32> to vector<8x128xf32>
    %228 = arith.negf %226 : vector<8x128xf32>
    %229 = math.exp %228 : vector<8x128xf32>
    %cst_43 = arith.constant 1.000000e+00 : f32
    %230 = vector.broadcast %cst_43 : f32 to vector<8x128xf32>
    %231 = arith.addf %230, %229 : vector<8x128xf32>
    %232 = arith.divf %230, %231 : vector<8x128xf32>
    %233 = math.tanh %227 : vector<8x128xf32>
    %234 = arith.negf %227 : vector<8x128xf32>
    %235 = math.exp %234 : vector<8x128xf32>
    %cst_44 = arith.constant 1.000000e+00 : f32
    %236 = vector.broadcast %cst_44 : f32 to vector<8x128xf32>
    %237 = arith.addf %236, %235 : vector<8x128xf32>
    %238 = arith.divf %236, %237 : vector<8x128xf32>
    %239 = vector.extract_strided_slice %232 {offsets = [0, 0], sizes = [8, 64], strides = [1, 1]} : vector<8x128xf32> to vector<8x64xf32>
    %240 = vector.extract_strided_slice %232 {offsets = [0, 64], sizes = [8, 64], strides = [1, 1]} : vector<8x128xf32> to vector<8x64xf32>
    %241 = vector.extract_strided_slice %233 {offsets = [0, 0], sizes = [8, 64], strides = [1, 1]} : vector<8x128xf32> to vector<8x64xf32>
    %242 = vector.extract_strided_slice %238 {offsets = [0, 64], sizes = [8, 64], strides = [1, 1]} : vector<8x128xf32> to vector<8x64xf32>
    %243 = arith.mulf %240, %218 : vector<8x64xf32>
    %244 = arith.mulf %239, %241 : vector<8x64xf32>
    %245 = arith.addf %243, %244 : vector<8x64xf32>
    %246 = math.tanh %245 : vector<8x64xf32>
    %247 = arith.mulf %242, %246 : vector<8x64xf32>
    %248 = vector.extract_strided_slice %247 {offsets = [0, 32], sizes = [8, 32], strides = [1, 1]} : vector<8x64xf32> to vector<8x32xf32>
    %249 = vector.extract_strided_slice %245 {offsets = [0, 32], sizes = [8, 32], strides = [1, 1]} : vector<8x64xf32> to vector<8x32xf32>
    %c0_45 = arith.constant 0 : index
    %c0_46 = arith.constant 0 : index
    %250 = vector.load %arg6[%c0_45, %c0_46] : memref<32x32xf32, #tpu.memory_space<vmem>>, vector<32x32xf32>
    %cst_47 = arith.constant dense<0.000000e+00> : vector<8x32xf32>
    %251 = tpu.matmul %248, %250, %cst_47 {dimension_numbers = #tpu.dot_dimension_numbers<[1], [0], [0], [1], [0, 0, 1, 1], [], []>} : vector<8x32xf32>, vector<32x32xf32>, vector<8x32xf32> -> vector<8x32xf32>
    %c0_48 = arith.constant 0 : index
    %c0_49 = arith.constant 0 : index
    %252 = vector.load %arg7[%c0_48, %c0_49] : memref<1x32xf32, #tpu.memory_space<vmem>>, vector<1x32xf32>
    %253 = vector.broadcast %252 : vector<1x32xf32> to vector<8x32xf32>
    %254 = arith.addf %251, %253 : vector<8x32xf32>
    %255 = math.tanh %254 : vector<8x32xf32>
    %cst_50 = arith.constant 0.000000e+00 : f32
    %256 = vector.broadcast %cst_50 : f32 to vector<8x96xf32>
    %257 = tpu.concatenate %255, %221, %248, %222, %249, %256 in 1 : vector<8x32xf32>, vector<8x32xf32>, vector<8x32xf32>, vector<8x32xf32>, vector<8x32xf32>, vector<8x96xf32> -> vector<8x256xf32>
    %c0_51 = arith.constant 0 : index
    %c0_52 = arith.constant 0 : index
    %258 = vector.load %arg8[%c0_51, %c0_52] : memref<8x256xf32, #tpu.memory_space<vmem>>, vector<8x256xf32>
    tpu.vector_store %arg8[%c0_51, %c0_52], %257 {strides = array<i32>} : memref<8x256xf32, #tpu.memory_space<vmem>>, vector<8x256xf32>,
    return
  }
}

</mosaic_0001>

<bundles_post_ra>
// kernel: netE_forward.1
= control target key start
LH: loop header
LB: loop body
LE: loop exit
PB: predicated region body
PF: predicated region fallthrough
CT: control target
= control target key end

     0   :  { %13 = vsyncpa [#allocation3], 0  ;;  %s1334_s30 = smov [#allocation2]   ;;  %s1335_s10 = smov 256   ;;  %s1780_s0 = inlined_call_operand.vmem [shape: f32[64,32], index: 0, kind: input, shape index: {}]   ;;  %s1781_s1 = inlined_call_operand.vmem [shape: f32[2,8,32], index: 1, kind: input, shape index: {}]   ;;  %s1782_s2 = inlined_call_operand.vmem [shape: f32[2,8,32], index: 2, kind: input, shape index: {}]   ;;  %s1783_s3 = inlined_call_operand.vmem [shape: f32[32,256], index: 3, kind: input, shape index: {}]   ;;  %s1784_s4 = inlined_call_operand.vmem [shape: f32[1,256], index: 4, kind: input, shape index: {}]   ;;  %s1785_s5 = inlined_call_operand.hbm [shape: f32[64,256], index: 5, kind: input, shape index: {}]   ;;  %s1786_s6 = inlined_call_operand.vmem [shape: f32[32,32], index: 6, kind: input, shape index: {}]   ;;  %s1787_s7 = inlined_call_operand.vmem [shape: f32[1,32], index: 7, kind: input, shape index: {}]   ;;  %s1788_s8 = inlined_call_operand.vmem [shape: f32[8,256], index: 8, kind: output, shape index: {}]  }
   0x1   :  { %s28_s29 = sshll.u32 %s1785_s5, 4  ;;  %s30_s9 = sshll.u32 %s1334_s30, 4  ;;  %s29_s29 = int_to_ptr.hbm [resolvable:$true] %s28_s29  ;;  %s31_s9 = int_to_ptr.vmem [resolvable:$true] %s30_s9 }
   0x2   :  { %s1336_s11 = smov 16  }
   0x3   :  { %36 = dma.hbm_to_vmem [thread:$0]  %s29_s29, 2048, %s31_s9, [#allocation3], %s1335_s10, %s1335_s10, %s1336_s11  }
   0x4   :  { %1332 = dma.done.wait [#allocation3], 2048  }
   0x5   :  { %1333 = vsyncadd [#allocation3], 4294965248  ;;  %v1152_v0 = vld [vmem:[%s1781_s1 + $0x8] sm:$0xff]  ;;  %v1391_v1 = vld [vmem:[#allocation2 + $0x70] sm:$0xff]  ;;  %s1337_s14 = smov 32   ;;  %vm67_vm0 = vcmask 261120  }
   0x6   :  { %197 = vrot.lane.b32.xlu0 %v1152_v0, %s1337_s14  ;;  %218 = vmatpush.msra.mxu2 %v1391_v1  ;;  %v1395_v2 = vld [vmem:[#allocation2 + $0x78] sm:$0xff]  ;;  %v1397_v3 = vld [vmem:[#allocation2 + $0x60] sm:$0xff]  ;;  %v1399_v4 = vld [vmem:[#allocation2 + $0x68] sm:$0xff]  ;;  %vm206_vm1 = vcmask 523264   ;;  %s1338_s5 = smov 64  }
   0x7   :  { %238 = vmatpush.msra.mxu3 %v1395_v2  ;;  %v1402_v5 = vld [vmem:[#allocation2 + $0x50] sm:$0xff]  ;;  %v1405_v6 = vld [vmem:[#allocation2 + $0x58] sm:$0xff]  ;;  %v1408_v7 = vld [vmem:[#allocation2 + $0x40] sm:$0xff] }
   0x8   :  { %219 = vmatpush.msra.mxu2 %v1397_v3  ;;  %v59_v8 = vld [vmem:[%s1783_s3 + $0x30] sm:$0xff]  ;;  %v1414_v9 = vld [vmem:[#allocation2 + $0x48] sm:$0xff]  ;;  %v60_v10 = vld [vmem:[%s1783_s3 + $0x38] sm:$0xff] }
   0x9   :  { %239 = vmatpush.msra.mxu3 %v1399_v4  ;;  %104 = vmatpush.msra.mxu0 %v59_v8  ;;  %v1153_v11 = vld [vmem:[%s1782_s2 + $0x8] sm:$0xff]  ;;  %v1423_v12 = vld [vmem:[#allocation2 + $0x30] sm:$0xff]  ;;  %v1426_v13 = vld [vmem:[#allocation2 + $0x38] sm:$0xff] }
   0xa   :  { %220 = vmatpush.msra.mxu2 %v1402_v5  ;;  %145 = vmatpush.msra.mxu1 %v60_v10  ;;  %v1429_v14 = vld [vmem:[#allocation2 + $0x20] sm:$0xff]  ;;  %v1433_v15 = vld [vmem:[#allocation2 + $0x28] sm:$0xff]  ;;  %v1436_v16 = vld [vmem:[#allocation2 + $0x10] sm:$0xff] }
   0xb   :  { %240 = vmatpush.msra.mxu3 %v1405_v6  ;;  %v1439_v17 = vld [vmem:[#allocation2 + $0x18] sm:$0xff]  ;;  %v57_v18 = vld [vmem:[%s1783_s3 + $0x20] sm:$0xff]  ;;  %v58_v19 = vld [vmem:[%s1783_s3 + $0x28] sm:$0xff] }
   0xc   :  { %221 = vmatpush.msra.mxu2 %v1408_v7  ;;  %v1450_v20 = vld [vmem:[#allocation2] sm:$0xff]  ;;  %105 = vmatpush.msra.mxu0 %v57_v18  ;;  %v1452_v21 = vld [vmem:[#allocation2 + $0x8] sm:$0xff]  ;;  %v55_v22 = vld [vmem:[%s1783_s3 + $0x10] sm:$0xff] }
   0xd   :  { %241 = vmatpush.msra.mxu3 %v1414_v9  ;;  %146 = vmatpush.msra.mxu1 %v58_v19  ;;  %v56_v23 = vld [vmem:[%s1783_s3 + $0x18] sm:$0xff]  ;;  %v53_v24 = vld [vmem:[%s1783_s3] sm:$0xff]  ;;  %v54_v25 = vld [vmem:[%s1783_s3 + $0x8] sm:$0xff] }
   0xe   :  { %202 = vrot.lane.b32.xlu0 %v1153_v11, %s1337_s14  ;;  %222 = vmatpush.msra.mxu2 %v1423_v12  ;;  %v45_v26 = vld [vmem:[%s1780_s0] sm:$0xff] }
   0xf   :  { %242 = vmatpush.msra.mxu3 %v1426_v13  ;;  %106 = vmatpush.msra.mxu0 %v55_v22  ;;  %v190_v27 = vld [vmem:[%s1781_s1] sm:$0xff] }
  0x10   :  { %223 = vmatpush.msra.mxu2 %v1429_v14  ;;  %147 = vmatpush.msra.mxu1 %v56_v23  ;;  %v193_v30 = vld [vmem:[%s1782_s2] sm:$0xff] }
  0x11   :  { %243 = vmatpush.msra.mxu3 %v1433_v15  ;;  %107 = vmatpush.msra.mxu0 %v53_v24  ;;  %v61_v33 = vld [vmem:[%s1784_s4] sm:$0x3] }
  0x12   :  { %224 = vmatpush.msra.mxu2 %v1436_v16  ;;  %148 = vmatpush.msra.mxu1 %v54_v25  ;;  %v1557_v34 = vperm.slane %v61_v33, 0  ;;  %v1560_v41 = vperm.slane %v61_v33, 1 }
  0x13   :  { %244 = vmatpush.msra.mxu3 %v1439_v17  ;;  %1136 = vmatmul.msk.f32.vlgmr.msra.gmra.mxu0 %vm67_vm0, %v45_v26 }
  0x14   :  { %225 = vmatpush.msra.mxu2 %v1450_v20  ;;  %1144 = vmatmul.msk.f32.vlgmr.msra.gmra.mxu1 %vm67_vm0, %v45_v26 }
  0x15   :  { %245 = vmatpush.msra.mxu3 %v1452_v21  ;;  %614 = vmatpush.msrb.mxu0 %v1391_v1 }
  0x16   :  { %325 = vmatpush.msrb.mxu2 %v1391_v1  ;;  %634 = vmatpush.msrb.mxu1 %v1395_v2 }
  0x17   :  { %345 = vmatpush.msrb.mxu3 %v1395_v2  ;;  %615 = vmatpush.msrb.mxu0 %v1397_v3 }
  0x18   :  { %326 = vmatpush.msrb.mxu2 %v1397_v3  ;;  %635 = vmatpush.msrb.mxu1 %v1399_v4 }
  0x19   :  { %346 = vmatpush.msrb.mxu3 %v1399_v4  ;;  %616 = vmatpush.msrb.mxu0 %v1402_v5 }
  0x1a   :  { %327 = vmatpush.msrb.mxu2 %v1402_v5  ;;  %636 = vmatpush.msrb.mxu1 %v1405_v6 }
  0x1b   :  { %347 = vmatpush.msrb.mxu3 %v1405_v6  ;;  %617 = vmatpush.msrb.mxu0 %v1408_v7 }
  0x1c   :  { %328 = vmatpush.msrb.mxu2 %v1408_v7  ;;  %637 = vmatpush.msrb.mxu1 %v1414_v9 }
  0x1d   :  { %348 = vmatpush.msrb.mxu3 %v1414_v9  ;;  %618 = vmatpush.msrb.mxu0 %v1423_v12 }
  0x1e   :  { %329 = vmatpush.msrb.mxu2 %v1423_v12  ;;  %638 = vmatpush.msrb.mxu1 %v1426_v13 }
  0x1f   :  { %349 = vmatpush.msrb.mxu3 %v1426_v13  ;;  %619 = vmatpush.msrb.mxu0 %v1429_v14 }
  0x20   :  { %330 = vmatpush.msrb.mxu2 %v1429_v14  ;;  %639 = vmatpush.msrb.mxu1 %v1433_v15 }
  0x21   :  { %350 = vmatpush.msrb.mxu3 %v1433_v15  ;;  %620 = vmatpush.msrb.mxu0 %v1436_v16 }
  0x22   :  { %331 = vmatpush.msrb.mxu2 %v1436_v16  ;;  %640 = vmatpush.msrb.mxu1 %v1439_v17 }
  0x23   :  { %351 = vmatpush.msrb.mxu3 %v1439_v17  ;;  %621 = vmatpush.msrb.mxu0 %v1450_v20 }
  0x24   :  { %332 = vmatpush.msrb.mxu2 %v1450_v20  ;;  %641 = vmatpush.msrb.mxu1 %v1452_v21 }
  0x25   :  { %352 = vmatpush.msrb.mxu3 %v1452_v21  ;;  %804 = vmatpush.msra.mxu0 %v1391_v1 }
  0x26   :  { %824 = vmatpush.msra.mxu1 %v1395_v2 }
  0x27   :  { %805 = vmatpush.msra.mxu0 %v1397_v3 }
  0x28   :  { %825 = vmatpush.msra.mxu1 %v1399_v4 }
  0x29   :  { %806 = vmatpush.msra.mxu0 %v1402_v5 }
  0x2a   :  { %826 = vmatpush.msra.mxu1 %v1405_v6 }
  0x2b   :  { %807 = vmatpush.msra.mxu0 %v1408_v7 }
  0x2c   :  { %827 = vmatpush.msra.mxu1 %v1414_v9 }
  0x2d   :  { %808 = vmatpush.msra.mxu0 %v1423_v12 }
  0x2e   :  { %828 = vmatpush.msra.mxu1 %v1426_v13 }
  0x2f   :  { %809 = vmatpush.msra.mxu0 %v1429_v14 }
  0x30   :  { %829 = vmatpush.msra.mxu1 %v1433_v15 }
  0x31   :  { %810 = vmatpush.msra.mxu0 %v1436_v16 }
  0x32   :  { %830 = vmatpush.msra.mxu1 %v1439_v17 }
  0x33   :  { %811 = vmatpush.msra.mxu0 %v1450_v20 }
  0x34   :  { %831 = vmatpush.msra.mxu1 %v1452_v21 }
  0x78   :  { %v1518_v28 = vpop.permute.xlu0 %197 }
  0x79   :  { %v200_v29 = vsel %vm67_vm0, %v190_v27, %v1518_v28 }
  0x7a   :  { %1154 = vmatmul.msk.f32.vlgmr.msra.gmra.mxu2 %vm206_vm1, %v200_v29  ;;  %1155 = vmatmul.msk.f32.vlgmr.msra.gmra.mxu3 %vm206_vm1, %v200_v29 }
  0x7b   :  { %424 = vmatpush.msra.mxu2 %v1391_v1  ;;  %444 = vmatpush.msra.mxu3 %v1395_v2 }
  0x7d   :  { %425 = vmatpush.msra.mxu2 %v1397_v3  ;;  %445 = vmatpush.msra.mxu3 %v1399_v4 }
  0x7f   :  { %426 = vmatpush.msra.mxu2 %v1402_v5  ;;  %446 = vmatpush.msra.mxu3 %v1405_v6 }
  0x80   :  { %v1539_v31 = vpop.permute.xlu0 %202 }
  0x81   :  { %v205_v32 = vsel %vm67_vm0, %v193_v30, %v1539_v31  ;;  %427 = vmatpush.msra.mxu2 %v1408_v7  ;;  %447 = vmatpush.msra.mxu3 %v1414_v9 }
  0x82   :  { %292 = vrot.lane.b32.xlu1 %v205_v32, %s1338_s5  ;;  %v46_v32 = vld [vmem:[%s1780_s0 + $0x8] sm:$0xff] }
  0x83   :  { %428 = vmatpush.msra.mxu2 %v1423_v12  ;;  %448 = vmatpush.msra.mxu3 %v1426_v13 }
  0x84   :  { %1137 = vmatmul.msk.f32.gmra.mxu0 %vm67_vm0, %v46_v32  ;;  %1145 = vmatmul.msk.f32.gmra.mxu1 %vm67_vm0, %v46_v32 }
  0x85   :  { %429 = vmatpush.msra.mxu2 %v1429_v14  ;;  %449 = vmatpush.msra.mxu3 %v1433_v15 }
  0x87   :  { %430 = vmatpush.msra.mxu2 %v1436_v16  ;;  %450 = vmatpush.msra.mxu3 %v1439_v17 }
  0x89   :  { %431 = vmatpush.msra.mxu2 %v1450_v20  ;;  %451 = vmatpush.msra.mxu3 %v1452_v21 }
  0x90   :  { %v109_v35 = vpop.f32.mrf.mxu0 }
  0x91   :  { %v110_v36 = vadd.f32 %v109_v35, %v1557_v34  ;;  %v150_v43 = vpop.f32.mrf.mxu1 }
  0x92   :  { %v151_v44 = vadd.f32 %v150_v43, %v1560_v41 }
  0xf4   :  { %v293_v0 = vpop.permute.xlu1 %292 }
  0xfd   :  { %v227_v37 = vpop.f32.mrf.mxu2  ;;  %v247_v45 = vpop.f32.mrf.mxu3 }
  0xfe   :  { %v250_v38 = vadd.f32 %v227_v37, %v110_v36  ;;  %v251_v47 = vadd.f32 %v247_v45, %v151_v44 }
 0x100   :  { %v1156_v39 = vmul.f32 -1.442695, %v250_v38  ;;  %v1157_v59 = vmul.f32 -1.442695, %v251_v47 }
 0x101   :  { %v153_v44 = vpop.f32.mrf.mxu1 }
 0x102   :  { %1198 = vpow2.f32 %v1156_v39  ;;  %v154_v45 = vadd.f32 %v153_v44, %v1560_v41 }
 0x108   :  { %v1199_v40 = vpop.eup %1198 }
 0x109   :  { %v255_v42 = vadd.f32 1.0, %v1199_v40 }
 0x10b   :  { %1200 = vrcp.f32 %v255_v42  ;;  %v267_v50 = vand.u32 2147483648, %v255_v42  ;;  %v265_v52 = vand.u32 2147483647, %v255_v42  ;;  %vm261_vm3 = vweird.f32 %v255_v42 }
 0x10c   :  { %1202 = vtanh.f32 %v251_v47 }
 0x10d   :  { %v268_v54 = vor.u32 1.1754944e-38, %v267_v50  ;;  %vm266_vm5 = vcmp.eq.f32.partialorder %v265_v52, 8.507059e+37  ;;  %1204 = vpow2.f32 %v1157_v59 }
 0x111   :  { %v1201_v46 = vpop.eup %1200 }
 0x112   :  { %v257_v48 = vmul.f32 %v1201_v46, %v255_v42  ;;  %vm262_vm2 = vweird.f32 %v1201_v46  ;;  %v1203_v56 = vpop.eup %1202 }
 0x113   :  { %vm263_vm4 = vmor %vm261_vm3, %vm262_vm2  ;;  %v1205_v60 = vpop.eup %1204 }
 0x114   :  { %v258_v49 = vsub.f32 1.0, %v257_v48  ;;  %v275_v61 = vadd.f32 1.0, %v1205_v60 }
 0x116   :  { %v259_v51 = vmul.f32 %v1201_v46, %v258_v49  ;;  %1206 = vrcp.f32 %v275_v61  ;;  %v287_v23 = vand.u32 2147483648, %v275_v61  ;;  %vm281_vm7 = vweird.f32 %v275_v61 }
 0x117   :  { %v285_v24 = vand.u32 2147483647, %v275_v61 }
 0x118   :  { %v260_v53 = vadd.f32 %v1201_v46, %v259_v51  ;;  %v288_v26 = vor.u32 1.1754944e-38, %v287_v23 }
 0x119   :  { %vm286_vm9 = vcmp.eq.f32.partialorder %v285_v24, 8.507059e+37 }
 0x11a   :  { %v264_v55 = vsel %vm263_vm4, %v1201_v46, %v260_v53 }
 0x11b   :  { %v269_v57 = vsel %vm266_vm5, %v268_v54, %v264_v55 }
 0x11c   :  { %v296_v58 = vmul.f32 %v1203_v56, %v269_v57  ;;  %v1207_v62 = vpop.eup %1206  ;;  %v295_v11 = vmul.f32 %v293_v0, %v269_v57 }
 0x11d   :  { %v277_v63 = vmul.f32 %v1207_v62, %v275_v61  ;;  %vm282_vm6 = vweird.f32 %v1207_v62 }
 0x11e   :  { %298 = vrot.lane.b32.xlu1 %v296_v58, %s1338_s5  ;;  %vm283_vm8 = vmor %vm281_vm7, %vm282_vm6 }
 0x11f   :  { %v278_v8 = vsub.f32 1.0, %v277_v63 }
 0x121   :  { %v279_v10 = vmul.f32 %v1207_v62, %v278_v8 }
 0x123   :  { %v280_v22 = vadd.f32 %v1207_v62, %v279_v10 }
 0x125   :  { %v284_v25 = vsel %vm283_vm8, %v1207_v62, %v280_v22 }
 0x126   :  { %v289_v29 = vsel %vm286_vm9, %v288_v26, %v284_v25 }
 0x190   :  { %v299_v18 = vpop.permute.xlu1 %298 }
 0x191   :  { %v301_v19 = vadd.f32 %v299_v18, %v295_v11 }
 0x193   :  { %1208 = vtanh.f32 %v301_v19 }
 0x199   :  { %v1209_v27 = vpop.eup %1208 }
 0x19a   :  { %v303_v30 = vmul.f32 %v1209_v27, %v289_v29 }
 0x19c   :  { %305 = vrot.lane.b32.xlu2 %v303_v30, %s1338_s5 }
 0x1a4   :  { %310 = vrot.lane.b32.xlu2 %v301_v19, %s1338_s5 }
 0x1f6   :  { %v306_v33 = vpop.permute.xlu2 %305 }
 0x1f7   :  { %v308_v35 = vsel %vm67_vm0, %v306_v33, %v1518_v28  ;;  %v47_v33 = vld [vmem:[%s1780_s0 + $0x10] sm:$0xff] }
 0x1f8   :  { %1158 = vmatmul.msk.f32.vlgmr.msrb.gmra.mxu2 %vm206_vm1, %v308_v35  ;;  %1159 = vmatmul.msk.f32.vlgmr.msrb.gmra.mxu3 %vm206_vm1, %v308_v35 }
 0x1f9   :  { %519 = vmatpush.msrb.mxu2 %v1391_v1  ;;  %539 = vmatpush.msrb.mxu3 %v1395_v2 }
 0x1fa   :  { %1138 = vmatmul.msk.f32.gmra.mxu0 %vm67_vm0, %v47_v33  ;;  %1146 = vmatmul.msk.f32.gmra.mxu1 %vm67_vm0, %v47_v33 }
 0x1fb   :  { %520 = vmatpush.msrb.mxu2 %v1397_v3  ;;  %540 = vmatpush.msrb.mxu3 %v1399_v4 }
 0x1fd   :  { %521 = vmatpush.msrb.mxu2 %v1402_v5  ;;  %541 = vmatpush.msrb.mxu3 %v1405_v6 }
 0x1fe   :  { %v311_v36 = vpop.permute.xlu2 %310 }
 0x1ff   :  { %v313_v28 = vsel %vm67_vm0, %v311_v36, %v1539_v31  ;;  %522 = vmatpush.msrb.mxu2 %v1408_v7  ;;  %542 = vmatpush.msrb.mxu3 %v1414_v9  ;;  %v112_v31 = vpop.f32.mrf.mxu0 }
 0x200   :  { %399 = vrot.lane.b32.xlu0 %v313_v28, %s1338_s5  ;;  %v113_v37 = vadd.f32 %v112_v31, %v1557_v34 }
 0x201   :  { %523 = vmatpush.msrb.mxu2 %v1423_v12  ;;  %543 = vmatpush.msrb.mxu3 %v1426_v13 }
 0x203   :  { %524 = vmatpush.msrb.mxu2 %v1429_v14  ;;  %544 = vmatpush.msrb.mxu3 %v1433_v15 }
 0x205   :  { %525 = vmatpush.msrb.mxu2 %v1436_v16  ;;  %545 = vmatpush.msrb.mxu3 %v1439_v17 }
 0x207   :  { %526 = vmatpush.msrb.mxu2 %v1450_v20  ;;  %546 = vmatpush.msrb.mxu3 %v1452_v21 }
 0x272   :  { %v400_v10 = vpop.permute.xlu0 %399 }
 0x277   :  { %v115_v36 = vpop.f32.mrf.mxu0 }
 0x278   :  { %v116_v28 = vadd.f32 %v115_v36, %v1557_v34 }
 0x27b   :  { %v334_v38 = vpop.f32.mrf.mxu2  ;;  %v354_v46 = vpop.f32.mrf.mxu3 }
 0x27c   :  { %v357_v39 = vadd.f32 %v334_v38, %v113_v37  ;;  %v358_v48 = vadd.f32 %v354_v46, %v154_v45 }
 0x27e   :  { %v1160_v40 = vmul.f32 -1.442695, %v357_v39  ;;  %v1161_v60 = vmul.f32 -1.442695, %v358_v48 }
 0x280   :  { %1210 = vpow2.f32 %v1160_v40 }
 0x286   :  { %v1211_v42 = vpop.eup %1210 }
 0x287   :  { %v362_v43 = vadd.f32 1.0, %v1211_v42  ;;  %v156_v42 = vpop.f32.mrf.mxu1 }
 0x289   :  { %1212 = vrcp.f32 %v362_v43  ;;  %v374_v51 = vand.u32 2147483648, %v362_v43  ;;  %v372_v53 = vand.u32 2147483647, %v362_v43  ;;  %vm368_vm11 = vweird.f32 %v362_v43 }
 0x28a   :  { %1214 = vtanh.f32 %v358_v48 }
 0x28b   :  { %v375_v55 = vor.u32 1.1754944e-38, %v374_v51  ;;  %vm373_vm13 = vcmp.eq.f32.partialorder %v372_v53, 8.507059e+37  ;;  %1216 = vpow2.f32 %v1161_v60 }
 0x28f   :  { %v1213_v47 = vpop.eup %1212 }
 0x290   :  { %v364_v49 = vmul.f32 %v1213_v47, %v362_v43  ;;  %vm369_vm10 = vweird.f32 %v1213_v47  ;;  %v1215_v57 = vpop.eup %1214  ;;  %v157_v43 = vadd.f32 %v156_v42, %v1560_v41 }
 0x291   :  { %vm370_vm12 = vmor %vm368_vm11, %vm369_vm10  ;;  %v1217_v61 = vpop.eup %1216 }
 0x292   :  { %v365_v50 = vsub.f32 1.0, %v364_v49  ;;  %v382_v62 = vadd.f32 1.0, %v1217_v61 }
 0x294   :  { %v366_v52 = vmul.f32 %v1213_v47, %v365_v50  ;;  %1218 = vrcp.f32 %v382_v62  ;;  %v394_v24 = vand.u32 2147483648, %v382_v62  ;;  %vm388_vm15 = vweird.f32 %v382_v62 }
 0x295   :  { %v392_v25 = vand.u32 2147483647, %v382_v62 }
 0x296   :  { %v367_v54 = vadd.f32 %v1213_v47, %v366_v52  ;;  %v395_v27 = vor.u32 1.1754944e-38, %v394_v24 }
 0x297   :  { %vm393_vm3 = vcmp.eq.f32.partialorder %v392_v25, 8.507059e+37 }
 0x298   :  { %v371_v56 = vsel %vm370_vm12, %v1213_v47, %v367_v54 }
 0x299   :  { %v376_v58 = vsel %vm373_vm13, %v375_v55, %v371_v56 }
 0x29a   :  { %v403_v59 = vmul.f32 %v1215_v57, %v376_v58  ;;  %v1219_v63 = vpop.eup %1218  ;;  %v402_v18 = vmul.f32 %v400_v10, %v376_v58 }
 0x29b   :  { %v384_v0 = vmul.f32 %v1219_v63, %v382_v62  ;;  %vm389_vm14 = vweird.f32 %v1219_v63 }
 0x29c   :  { %405 = vrot.lane.b32.xlu1 %v403_v59, %s1338_s5  ;;  %vm390_vm2 = vmor %vm388_vm15, %vm389_vm14 }
 0x29d   :  { %v385_v8 = vsub.f32 1.0, %v384_v0 }
 0x29f   :  { %v386_v11 = vmul.f32 %v1219_v63, %v385_v8 }
 0x2a1   :  { %v387_v23 = vadd.f32 %v1219_v63, %v386_v11 }
 0x2a3   :  { %v391_v26 = vsel %vm390_vm2, %v1219_v63, %v387_v23 }
 0x2a4   :  { %v396_v30 = vsel %vm393_vm3, %v395_v27, %v391_v26 }
 0x30e   :  { %v406_v19 = vpop.permute.xlu1 %405 }
 0x30f   :  { %v1597_v22 = vadd.f32 %v406_v19, %v402_v18 }
 0x311   :  { %1220 = vtanh.f32 %v1597_v22 }
 0x317   :  { %v1221_v29 = vpop.eup %1220 }
 0x318   :  { %v410_v32 = vmul.f32 %v1221_v29, %v396_v30 }
 0x31a   :  { %412 = vrot.lane.b32.xlu2 %v410_v32, %s1338_s5 }
 0x374   :  { %v413_v35 = vpop.permute.xlu2 %412 }
 0x375   :  { %1162 = vmatmul.msk.f32.vlgmr.msra.gmra.mxu2 %vm206_vm1, %v413_v35  ;;  %1163 = vmatmul.msk.f32.vlgmr.msra.gmra.mxu3 %vm206_vm1, %v413_v35 }
 0x376   :  { %709 = vmatpush.msra.mxu2 %v1391_v1  ;;  %729 = vmatpush.msra.mxu3 %v1395_v2 }
 0x378   :  { %710 = vmatpush.msra.mxu2 %v1397_v3  ;;  %730 = vmatpush.msra.mxu3 %v1399_v4 }
 0x37a   :  { %711 = vmatpush.msra.mxu2 %v1402_v5  ;;  %731 = vmatpush.msra.mxu3 %v1405_v6 }
 0x37c   :  { %712 = vmatpush.msra.mxu2 %v1408_v7  ;;  %732 = vmatpush.msra.mxu3 %v1414_v9 }
 0x37e   :  { %713 = vmatpush.msra.mxu2 %v1423_v12  ;;  %733 = vmatpush.msra.mxu3 %v1426_v13 }
 0x380   :  { %714 = vmatpush.msra.mxu2 %v1429_v14  ;;  %734 = vmatpush.msra.mxu3 %v1433_v15 }
 0x382   :  { %715 = vmatpush.msra.mxu2 %v1436_v16  ;;  %735 = vmatpush.msra.mxu3 %v1439_v17 }
 0x384   :  { %716 = vmatpush.msra.mxu2 %v1450_v20  ;;  %736 = vmatpush.msra.mxu3 %v1452_v21 }
 0x3f8   :  { %v433_v31 = vpop.f32.mrf.mxu2  ;;  %v453_v44 = vpop.f32.mrf.mxu3 }
 0x3f9   :  { %v456_v37 = vadd.f32 %v433_v31, %v116_v28  ;;  %v457_v46 = vadd.f32 %v453_v44, %v157_v43 }
 0x3fb   :  { %v1164_v38 = vmul.f32 -1.442695, %v456_v37  ;;  %v1165_v58 = vmul.f32 -1.442695, %v457_v46 }
 0x3fd   :  { %1222 = vpow2.f32 %v1164_v38 }
 0x403   :  { %v1223_v39 = vpop.eup %1222 }
 0x404   :  { %v461_v40 = vadd.f32 1.0, %v1223_v39 }
 0x406   :  { %1224 = vrcp.f32 %v461_v40  ;;  %v473_v49 = vand.u32 2147483648, %v461_v40  ;;  %v471_v51 = vand.u32 2147483647, %v461_v40  ;;  %vm467_vm5 = vweird.f32 %v461_v40 }
 0x407   :  { %1226 = vtanh.f32 %v457_v46 }
 0x408   :  { %v474_v53 = vor.u32 1.1754944e-38, %v473_v49  ;;  %vm472_vm7 = vcmp.eq.f32.partialorder %v471_v51, 8.507059e+37  ;;  %1228 = vpow2.f32 %v1165_v58  ;;  %v49_v58 = vld [vmem:[%s1780_s0 + $0x20] sm:$0xff] }
 0x40c   :  { %v1225_v45 = vpop.eup %1224 }
 0x40d   :  { %v463_v47 = vmul.f32 %v1225_v45, %v461_v40  ;;  %vm468_vm4 = vweird.f32 %v1225_v45  ;;  %v1227_v55 = vpop.eup %1226 }
 0x40e   :  { %vm469_vm6 = vmor %vm467_vm5, %vm468_vm4  ;;  %v1229_v59 = vpop.eup %1228 }
 0x40f   :  { %v464_v48 = vsub.f32 1.0, %v463_v47  ;;  %v481_v60 = vadd.f32 1.0, %v1229_v59  ;;  %v50_v59 = vld [vmem:[%s1780_s0 + $0x28] sm:$0xff] }
 0x411   :  { %v465_v50 = vmul.f32 %v1225_v45, %v464_v48  ;;  %1230 = vrcp.f32 %v481_v60  ;;  %v493_v19 = vand.u32 2147483648, %v481_v60  ;;  %vm487_vm9 = vweird.f32 %v481_v60 }
 0x412   :  { %v491_v23 = vand.u32 2147483647, %v481_v60 }
 0x413   :  { %v466_v52 = vadd.f32 %v1225_v45, %v465_v50  ;;  %v494_v25 = vor.u32 1.1754944e-38, %v493_v19 }
 0x414   :  { %vm492_vm11 = vcmp.eq.f32.partialorder %v491_v23, 8.507059e+37  ;;  %v52_v23 = vld [vmem:[%s1780_s0 + $0x38] sm:$0xff] }
 0x415   :  { %v470_v54 = vsel %vm469_vm6, %v1225_v45, %v466_v52 }
 0x416   :  { %v475_v56 = vsel %vm472_vm7, %v474_v53, %v470_v54 }
 0x417   :  { %v498_v57 = vmul.f32 %v1227_v55, %v475_v56  ;;  %v1231_v61 = vpop.eup %1230  ;;  %v497_v8 = vmul.f32 %v475_v56, %v1597_v22  ;;  %v48_v22 = vld [vmem:[%s1780_s0 + $0x18] sm:$0xff] }
 0x418   :  { %v483_v62 = vmul.f32 %v1231_v61, %v481_v60  ;;  %vm488_vm8 = vweird.f32 %v1231_v61  ;;  %1139 = vmatmul.msk.f32.gmra.mxu0 %vm67_vm0, %v48_v22  ;;  %1147 = vmatmul.msk.f32.gmra.mxu1 %vm67_vm0, %v48_v22 }
 0x419   :  { %500 = vrot.lane.b32.xlu0 %v498_v57, %s1338_s5  ;;  %vm489_vm10 = vmor %vm487_vm9, %vm488_vm8 }
 0x41a   :  { %v484_v63 = vsub.f32 1.0, %v483_v62 }
 0x41c   :  { %v485_v0 = vmul.f32 %v1231_v61, %v484_v63  ;;  %v51_v63 = vld [vmem:[%s1780_s0 + $0x30] sm:$0xff]  ;;  %s1339_s0 = smov 96  }
 0x41e   :  { %v486_v18 = vadd.f32 %v1231_v61, %v485_v0 }
 0x420   :  { %v490_v24 = vsel %vm489_vm10, %v1231_v61, %v486_v18  ;;  %1140 = vmatmul.msk.f32.gmra.mxu0 %vm67_vm0, %v49_v58  ;;  %1148 = vmatmul.msk.f32.gmra.mxu1 %vm67_vm0, %v49_v58 }
 0x421   :  { %v495_v27 = vsel %vm492_vm11, %v494_v25, %v490_v24 }
 0x428   :  { %1141 = vmatmul.msk.f32.gmra.mxu0 %vm67_vm0, %v50_v59  ;;  %1149 = vmatmul.msk.f32.gmra.mxu1 %vm67_vm0, %v50_v59 }
 0x430   :  { %1142 = vmatmul.msk.f32.gmra.mxu0 %vm67_vm0, %v51_v63  ;;  %1150 = vmatmul.msk.f32.gmra.mxu1 %vm67_vm0, %v51_v63 }
 0x438   :  { %1143 = vmatmul.msk.f32.gmra.mxu0 %vm67_vm0, %v52_v23  ;;  %1151 = vmatmul.msk.f32.gmra.mxu1 %vm67_vm0, %v52_v23 }
 0x48b   :  { %v501_v10 = vpop.permute.xlu0 %500 }
 0x48c   :  { %v1628_v11 = vadd.f32 %v501_v10, %v497_v8 }
 0x48e   :  { %1232 = vtanh.f32 %v1628_v11 }
 0x494   :  { %v1233_v26 = vpop.eup %1232 }
 0x495   :  { %v505_v29 = vmul.f32 %v1233_v26, %v495_v27  ;;  %v118_v32 = vpop.f32.mrf.mxu0  ;;  %v159_v38 = vpop.f32.mrf.mxu1 }
 0x496   :  { %v119_v33 = vadd.f32 %v118_v32, %v1557_v34  ;;  %v160_v39 = vadd.f32 %v159_v38, %v1560_v41 }
 0x497   :  { %507 = vrot.lane.b32.xlu1 %v505_v29, %s1338_s5 }
 0x509   :  { %v508_v30 = vpop.permute.xlu1 %507 }
 0x50a   :  { %1166 = vmatmul.msk.f32.vlgmr.msrb.gmra.mxu2 %vm206_vm1, %v508_v30  ;;  %1167 = vmatmul.msk.f32.vlgmr.msrb.gmra.mxu3 %vm206_vm1, %v508_v30 }
 0x50b   :  { %899 = vmatpush.msrb.mxu2 %v1391_v1  ;;  %919 = vmatpush.msrb.mxu3 %v1395_v2 }
 0x50d   :  { %900 = vmatpush.msrb.mxu2 %v1397_v3  ;;  %920 = vmatpush.msrb.mxu3 %v1399_v4 }
 0x50f   :  { %901 = vmatpush.msrb.mxu2 %v1402_v5  ;;  %921 = vmatpush.msrb.mxu3 %v1405_v6 }
 0x511   :  { %902 = vmatpush.msrb.mxu2 %v1408_v7  ;;  %922 = vmatpush.msrb.mxu3 %v1414_v9 }
 0x513   :  { %903 = vmatpush.msrb.mxu2 %v1423_v12  ;;  %923 = vmatpush.msrb.mxu3 %v1426_v13 }
 0x515   :  { %904 = vmatpush.msrb.mxu2 %v1429_v14  ;;  %924 = vmatpush.msrb.mxu3 %v1433_v15 }
 0x517   :  { %905 = vmatpush.msrb.mxu2 %v1436_v16  ;;  %925 = vmatpush.msrb.mxu3 %v1439_v17 }
 0x519   :  { %906 = vmatpush.msrb.mxu2 %v1450_v20  ;;  %926 = vmatpush.msrb.mxu3 %v1452_v21 }
 0x58d   :  { %v528_v35 = vpop.f32.mrf.mxu2  ;;  %v548_v40 = vpop.f32.mrf.mxu3 }
 0x58e   :  { %v551_v36 = vadd.f32 %v528_v35, %v119_v33  ;;  %v552_v43 = vadd.f32 %v548_v40, %v160_v39 }
 0x590   :  { %v1168_v28 = vmul.f32 -1.442695, %v551_v36  ;;  %v1169_v55 = vmul.f32 -1.442695, %v552_v43 }
 0x592   :  { %1234 = vpow2.f32 %v1168_v28 }
 0x598   :  { %v1235_v31 = vpop.eup %1234 }
 0x599   :  { %v556_v37 = vadd.f32 1.0, %v1235_v31 }
 0x59b   :  { %1236 = vrcp.f32 %v556_v37  ;;  %v568_v46 = vand.u32 2147483648, %v556_v37  ;;  %v566_v48 = vand.u32 2147483647, %v556_v37  ;;  %vm562_vm13 = vweird.f32 %v556_v37 }
 0x59c   :  { %1238 = vtanh.f32 %v552_v43 }
 0x59d   :  { %v569_v50 = vor.u32 1.1754944e-38, %v568_v46  ;;  %vm567_vm15 = vcmp.eq.f32.partialorder %v566_v48, 8.507059e+37  ;;  %1240 = vpow2.f32 %v1169_v55 }
 0x5a1   :  { %v1237_v42 = vpop.eup %1236 }
 0x5a2   :  { %v558_v44 = vmul.f32 %v1237_v42, %v556_v37  ;;  %vm563_vm12 = vweird.f32 %v1237_v42  ;;  %v1239_v52 = vpop.eup %1238 }
 0x5a3   :  { %vm564_vm14 = vmor %vm562_vm13, %vm563_vm12  ;;  %v1241_v56 = vpop.eup %1240 }
 0x5a4   :  { %v559_v45 = vsub.f32 1.0, %v558_v44  ;;  %v576_v57 = vadd.f32 1.0, %v1241_v56 }
 0x5a6   :  { %v560_v47 = vmul.f32 %v1237_v42, %v559_v45  ;;  %1242 = vrcp.f32 %v576_v57  ;;  %v588_v24 = vand.u32 2147483648, %v576_v57  ;;  %vm582_vm3 = vweird.f32 %v576_v57 }
 0x5a7   :  { %v586_v25 = vand.u32 2147483647, %v576_v57 }
 0x5a8   :  { %v561_v49 = vadd.f32 %v1237_v42, %v560_v47  ;;  %v589_v26 = vor.u32 1.1754944e-38, %v588_v24 }
 0x5a9   :  { %vm587_vm5 = vcmp.eq.f32.partialorder %v586_v25, 8.507059e+37 }
 0x5aa   :  { %v565_v51 = vsel %vm564_vm14, %v1237_v42, %v561_v49 }
 0x5ab   :  { %v570_v53 = vsel %vm567_vm15, %v569_v50, %v565_v51 }
 0x5ac   :  { %v593_v54 = vmul.f32 %v1239_v52, %v570_v53  ;;  %v1243_v60 = vpop.eup %1242  ;;  %v592_v8 = vmul.f32 %v570_v53, %v1628_v11 }
 0x5ad   :  { %v578_v61 = vmul.f32 %v1243_v60, %v576_v57  ;;  %vm583_vm2 = vweird.f32 %v1243_v60 }
 0x5ae   :  { %595 = vrot.lane.b32.xlu2 %v593_v54, %s1338_s5  ;;  %vm584_vm4 = vmor %vm582_vm3, %vm583_vm2 }
 0x5af   :  { %v579_v62 = vsub.f32 1.0, %v578_v61 }
 0x5b1   :  { %v580_v0 = vmul.f32 %v1243_v60, %v579_v62 }
 0x5b3   :  { %v581_v19 = vadd.f32 %v1243_v60, %v580_v0 }
 0x5b5   :  { %v585_v11 = vsel %vm584_vm4, %v1243_v60, %v581_v19 }
 0x5b6   :  { %v590_v29 = vsel %vm587_vm5, %v589_v26, %v585_v11 }
 0x608   :  { %v596_v10 = vpop.permute.xlu2 %595 }
 0x609   :  { %v1674_v18 = vadd.f32 %v596_v10, %v592_v8 }
 0x60b   :  { %1244 = vtanh.f32 %v1674_v18 }
 0x611   :  { %v1245_v27 = vpop.eup %1244 }
 0x612   :  { %v600_v22 = vmul.f32 %v1245_v27, %v590_v29 }
 0x614   :  { %602 = vrot.lane.b32.xlu0 %v600_v22, %s1338_s5 }
 0x686   :  { %v603_v30 = vpop.permute.xlu0 %602 }
 0x687   :  { %1170 = vmatmul.msk.f32.vlgmr.msrb.gmra.mxu0 %vm206_vm1, %v603_v30  ;;  %1171 = vmatmul.msk.f32.vlgmr.msrb.gmra.mxu1 %vm206_vm1, %v603_v30 }
 0x688   :  { %994 = vmatpush.msrb.mxu0 %v1391_v1  ;;  %1014 = vmatpush.msrb.mxu1 %v1395_v2  ;;  %v121_v1 = vpop.f32.mrf.mxu0 }
 0x68a   :  { %995 = vmatpush.msrb.mxu0 %v1397_v3  ;;  %1015 = vmatpush.msrb.mxu1 %v1399_v4  ;;  %v162_v3 = vpop.f32.mrf.mxu1 }
 0x68c   :  { %996 = vmatpush.msrb.mxu0 %v1402_v5  ;;  %1016 = vmatpush.msrb.mxu1 %v1405_v6 }
 0x68e   :  { %997 = vmatpush.msrb.mxu0 %v1408_v7  ;;  %1017 = vmatpush.msrb.mxu1 %v1414_v9  ;;  %v122_v9 = vadd.f32 %v121_v1, %v1557_v34 }
 0x690   :  { %998 = vmatpush.msrb.mxu0 %v1423_v12  ;;  %1018 = vmatpush.msrb.mxu1 %v1426_v13  ;;  %v1701_v2 = vpop.f32.mrf.mxu0 }
 0x691   :  { %v125_v0 = vadd.f32 %v1701_v2, %v1557_v34 }
 0x692   :  { %999 = vmatpush.msrb.mxu0 %v1429_v14  ;;  %1019 = vmatpush.msrb.mxu1 %v1433_v15  ;;  %v1705_v5 = vpop.f32.mrf.mxu1 }
 0x693   :  { %v166_v25 = vadd.f32 %v1705_v5, %v1560_v41 }
 0x694   :  { %1000 = vmatpush.msrb.mxu0 %v1436_v16  ;;  %1020 = vmatpush.msrb.mxu1 %v1439_v17 }
 0x696   :  { %1001 = vmatpush.msrb.mxu0 %v1450_v20  ;;  %1021 = vmatpush.msrb.mxu1 %v1452_v21  ;;  %v163_v21 = vadd.f32 %v162_v3, %v1560_v41 }
 0x698   :  { %v1703_v4 = vpop.f32.mrf.mxu0 }
 0x69a   :  { %v1709_v7 = vpop.f32.mrf.mxu1 }
 0x6a0   :  { %v1707_v6 = vpop.f32.mrf.mxu0 }
 0x6a2   :  { %v1712_v15 = vpop.f32.mrf.mxu1 }
 0x704   :  { %v623_v12 = vpop.f32.mrf.mxu0  ;;  %v643_v20 = vpop.f32.mrf.mxu1 }
 0x705   :  { %v646_v13 = vadd.f32 %v623_v12, %v122_v9  ;;  %v647_v33 = vadd.f32 %v643_v20, %v163_v21 }
 0x707   :  { %v1172_v14 = vmul.f32 -1.442695, %v646_v13  ;;  %v1173_v45 = vmul.f32 -1.442695, %v647_v33 }
 0x709   :  { %1246 = vpow2.f32 %v1172_v14 }
 0x70f   :  { %v1247_v16 = vpop.eup %1246 }
 0x710   :  { %v651_v17 = vadd.f32 1.0, %v1247_v16 }
 0x712   :  { %1248 = vrcp.f32 %v651_v17  ;;  %v663_v28 = vand.u32 2147483648, %v651_v17  ;;  %v661_v37 = vand.u32 2147483647, %v651_v17  ;;  %vm657_vm7 = vweird.f32 %v651_v17 }
 0x713   :  { %1250 = vtanh.f32 %v647_v33 }
 0x714   :  { %v664_v39 = vor.u32 1.1754944e-38, %v663_v28  ;;  %vm662_vm9 = vcmp.eq.f32.partialorder %v661_v37, 8.507059e+37  ;;  %1252 = vpow2.f32 %v1173_v45 }
 0x718   :  { %v1249_v32 = vpop.eup %1248 }
 0x719   :  { %v653_v35 = vmul.f32 %v1249_v32, %v651_v17  ;;  %vm658_vm6 = vweird.f32 %v1249_v32  ;;  %v1251_v42 = vpop.eup %1250 }
 0x71a   :  { %vm659_vm8 = vmor %vm657_vm7, %vm658_vm6  ;;  %v1253_v46 = vpop.eup %1252 }
 0x71b   :  { %v654_v36 = vsub.f32 1.0, %v653_v35  ;;  %v671_v47 = vadd.f32 1.0, %v1253_v46  ;;  %v128_v46 = vadd.f32 %v1703_v4, %v1557_v34 }
 0x71d   :  { %v655_v31 = vmul.f32 %v1249_v32, %v654_v36  ;;  %1254 = vrcp.f32 %v671_v47  ;;  %v683_v56 = vand.u32 2147483648, %v671_v47  ;;  %vm677_vm11 = vweird.f32 %v671_v47 }
 0x71e   :  { %v681_v57 = vand.u32 2147483647, %v671_v47 }
 0x71f   :  { %v656_v38 = vadd.f32 %v1249_v32, %v655_v31  ;;  %v684_v59 = vor.u32 1.1754944e-38, %v683_v56 }
 0x720   :  { %vm682_vm13 = vcmp.eq.f32.partialorder %v681_v57, 8.507059e+37 }
 0x721   :  { %v660_v40 = vsel %vm659_vm8, %v1249_v32, %v656_v38 }
 0x722   :  { %v665_v43 = vsel %vm662_vm9, %v664_v39, %v660_v40 }
 0x723   :  { %v688_v44 = vmul.f32 %v1251_v42, %v665_v43  ;;  %v1255_v48 = vpop.eup %1254  ;;  %v687_v52 = vmul.f32 %v665_v43, %v1674_v18 }
 0x724   :  { %v673_v49 = vmul.f32 %v1255_v48, %v671_v47  ;;  %vm678_vm10 = vweird.f32 %v1255_v48 }
 0x725   :  { %690 = vrot.lane.b32.xlu1 %v688_v44, %s1338_s5  ;;  %vm679_vm12 = vmor %vm677_vm11, %vm678_vm10 }
 0x726   :  { %v674_v50 = vsub.f32 1.0, %v673_v49 }
 0x728   :  { %v675_v51 = vmul.f32 %v1255_v48, %v674_v50 }
 0x72a   :  { %v676_v55 = vadd.f32 %v1255_v48, %v675_v51 }
 0x72c   :  { %v680_v58 = vsel %vm679_vm12, %v1255_v48, %v676_v55 }
 0x72d   :  { %v685_v61 = vsel %vm682_vm13, %v684_v59, %v680_v58 }
 0x797   :  { %v691_v53 = vpop.permute.xlu1 %690 }
 0x798   :  { %v693_v54 = vadd.f32 %v691_v53, %v687_v52  ;;  %v169_v53 = vadd.f32 %v1709_v7, %v1560_v41 }
 0x79a   :  { %1256 = vtanh.f32 %v693_v54 }
 0x7a0   :  { %v1257_v60 = vpop.eup %1256 }
 0x7a1   :  { %v695_v62 = vmul.f32 %v1257_v60, %v685_v61 }
 0x7a3   :  { %697 = vrot.lane.b32.xlu2 %v695_v62, %s1338_s5 }
 0x7fd   :  { %v698_v63 = vpop.permute.xlu2 %697 }
 0x7fe   :  { %1174 = vmatmul.msk.f32.vlgmr.msra.gmra.mxu2 %vm206_vm1, %v698_v63  ;;  %1175 = vmatmul.msk.f32.vlgmr.msra.gmra.mxu3 %vm206_vm1, %v698_v63 }
 0x881   :  { %v718_v8 = vpop.f32.mrf.mxu2  ;;  %v738_v24 = vpop.f32.mrf.mxu3 }
 0x882   :  { %v741_v10 = vadd.f32 %v718_v8, %v125_v0  ;;  %v742_v26 = vadd.f32 %v738_v24, %v166_v25 }
 0x884   :  { %v1176_v18 = vmul.f32 -1.442695, %v741_v10  ;;  %v1177_v5 = vmul.f32 -1.442695, %v742_v26 }
 0x886   :  { %1258 = vpow2.f32 %v1176_v18 }
 0x88c   :  { %v1259_v19 = vpop.eup %1258 }
 0x88d   :  { %v746_v23 = vadd.f32 1.0, %v1259_v19 }
 0x88f   :  { %1260 = vrcp.f32 %v746_v23  ;;  %v758_v22 = vand.u32 2147483648, %v746_v23  ;;  %v756_v1 = vand.u32 2147483647, %v746_v23  ;;  %vm752_vm15 = vweird.f32 %v746_v23 }
 0x890   :  { %1262 = vtanh.f32 %v742_v26 }
 0x891   :  { %v759_v3 = vor.u32 1.1754944e-38, %v758_v22  ;;  %vm757_vm3 = vcmp.eq.f32.partialorder %v756_v1, 8.507059e+37  ;;  %1264 = vpow2.f32 %v1177_v5 }
 0x895   :  { %v1261_v11 = vpop.eup %1260 }
 0x896   :  { %v748_v27 = vmul.f32 %v1261_v11, %v746_v23  ;;  %vm753_vm14 = vweird.f32 %v1261_v11  ;;  %v1263_v12 = vpop.eup %1262 }
 0x897   :  { %vm754_vm2 = vmor %vm752_vm15, %vm753_vm14  ;;  %v1265_v16 = vpop.eup %1264 }
 0x898   :  { %v749_v29 = vsub.f32 1.0, %v748_v27  ;;  %v766_v17 = vadd.f32 1.0, %v1265_v16 }
 0x89a   :  { %v750_v30 = vmul.f32 %v1261_v11, %v749_v29  ;;  %1266 = vrcp.f32 %v766_v17  ;;  %v778_v37 = vand.u32 2147483648, %v766_v17  ;;  %vm772_vm5 = vweird.f32 %v766_v17 }
 0x89b   :  { %v776_v38 = vand.u32 2147483647, %v766_v17 }
 0x89c   :  { %v751_v2 = vadd.f32 %v1261_v11, %v750_v30  ;;  %v779_v40 = vor.u32 1.1754944e-38, %v778_v37 }
 0x89d   :  { %vm777_vm7 = vcmp.eq.f32.partialorder %v776_v38, 8.507059e+37 }
 0x89e   :  { %v755_v9 = vsel %vm754_vm2, %v1261_v11, %v751_v2 }
 0x89f   :  { %v760_v13 = vsel %vm757_vm3, %v759_v3, %v755_v9 }
 0x8a0   :  { %v783_v14 = vmul.f32 %v1263_v12, %v760_v13  ;;  %v1267_v20 = vpop.eup %1266  ;;  %v782_v35 = vmul.f32 %v760_v13, %v693_v54 }
 0x8a1   :  { %v768_v21 = vmul.f32 %v1267_v20, %v766_v17  ;;  %vm773_vm4 = vweird.f32 %v1267_v20 }
 0x8a2   :  { %785 = vrot.lane.b32.xlu0 %v783_v14, %s1338_s5  ;;  %vm774_vm6 = vmor %vm772_vm5, %vm773_vm4  ;;  %v131_v14 = vadd.f32 %v1707_v6, %v1557_v34 }
 0x8a3   :  { %v769_v32 = vsub.f32 1.0, %v768_v21 }
 0x8a5   :  { %v770_v33 = vmul.f32 %v1267_v20, %v769_v32 }
 0x8a7   :  { %v771_v31 = vadd.f32 %v1267_v20, %v770_v33  ;;  %v172_v33 = vadd.f32 %v1712_v15, %v1560_v41 }
 0x8a9   :  { %v775_v39 = vsel %vm774_vm6, %v1267_v20, %v771_v31 }
 0x8aa   :  { %v780_v43 = vsel %vm777_vm7, %v779_v40, %v775_v39 }
 0x914   :  { %v786_v36 = vpop.permute.xlu0 %785 }
 0x915   :  { %v788_v28 = vadd.f32 %v786_v36, %v782_v35 }
 0x917   :  { %1268 = vtanh.f32 %v788_v28 }
 0x91d   :  { %v1269_v42 = vpop.eup %1268 }
 0x91e   :  { %v790_v44 = vmul.f32 %v1269_v42, %v780_v43 }
 0x920   :  { %792 = vrot.lane.b32.xlu1 %v790_v44, %s1338_s5 }
 0x992   :  { %v793_v45 = vpop.permute.xlu1 %792 }
 0x993   :  { %1178 = vmatmul.msk.f32.vlgmr.msra.gmra.mxu0 %vm206_vm1, %v793_v45  ;;  %1179 = vmatmul.msk.f32.vlgmr.msra.gmra.mxu1 %vm206_vm1, %v793_v45 }
 0xa10   :  { %v813_v47 = vpop.f32.mrf.mxu0  ;;  %v833_v52 = vpop.f32.mrf.mxu1 }
 0xa11   :  { %v836_v48 = vadd.f32 %v813_v47, %v128_v46  ;;  %v837_v55 = vadd.f32 %v833_v52, %v169_v53 }
 0xa13   :  { %v1180_v49 = vmul.f32 -1.442695, %v836_v48  ;;  %v1181_v7 = vmul.f32 -1.442695, %v837_v55 }
 0xa15   :  { %1270 = vpow2.f32 %v1180_v49 }
 0xa1b   :  { %v1271_v50 = vpop.eup %1270 }
 0xa1c   :  { %v841_v51 = vadd.f32 1.0, %v1271_v50 }
 0xa1e   :  { %1272 = vrcp.f32 %v841_v51  ;;  %v853_v58 = vand.u32 2147483648, %v841_v51  ;;  %v851_v4 = vand.u32 2147483647, %v841_v51  ;;  %vm847_vm9 = vweird.f32 %v841_v51 }
 0xa1f   :  { %1274 = vtanh.f32 %v837_v55 }
 0xa20   :  { %v854_v61 = vor.u32 1.1754944e-38, %v853_v58  ;;  %vm852_vm11 = vcmp.eq.f32.partialorder %v851_v4, 8.507059e+37  ;;  %1276 = vpow2.f32 %v1181_v7 }
 0xa24   :  { %v1273_v54 = vpop.eup %1272 }
 0xa25   :  { %v843_v56 = vmul.f32 %v1273_v54, %v841_v51  ;;  %vm848_vm8 = vweird.f32 %v1273_v54  ;;  %v1275_v63 = vpop.eup %1274 }
 0xa26   :  { %vm849_vm10 = vmor %vm847_vm9, %vm848_vm8  ;;  %v1277_v10 = vpop.eup %1276 }
 0xa27   :  { %v844_v57 = vsub.f32 1.0, %v843_v56  ;;  %v861_v18 = vadd.f32 1.0, %v1277_v10 }
 0xa29   :  { %v845_v59 = vmul.f32 %v1273_v54, %v844_v57  ;;  %1278 = vrcp.f32 %v861_v18  ;;  %v873_v22 = vand.u32 2147483648, %v861_v18  ;;  %vm867_vm13 = vweird.f32 %v861_v18 }
 0xa2a   :  { %v871_v30 = vand.u32 2147483647, %v861_v18 }
 0xa2b   :  { %v846_v60 = vadd.f32 %v1273_v54, %v845_v59  ;;  %v874_v2 = vor.u32 1.1754944e-38, %v873_v22 }
 0xa2c   :  { %vm872_vm15 = vcmp.eq.f32.partialorder %v871_v30, 8.507059e+37 }
 0xa2d   :  { %v850_v62 = vsel %vm849_vm10, %v1273_v54, %v846_v60 }
 0xa2e   :  { %v855_v0 = vsel %vm852_vm11, %v854_v61, %v850_v62 }
 0xa2f   :  { %v878_v8 = vmul.f32 %v1275_v63, %v855_v0  ;;  %v1279_v19 = vpop.eup %1278  ;;  %v877_v11 = vmul.f32 %v855_v0, %v788_v28 }
 0xa30   :  { %v863_v23 = vmul.f32 %v1279_v19, %v861_v18  ;;  %vm868_vm12 = vweird.f32 %v1279_v19 }
 0xa31   :  { %880 = vrot.lane.b32.xlu2 %v878_v8, %s1338_s5  ;;  %vm869_vm14 = vmor %vm867_vm13, %vm868_vm12 }
 0xa32   :  { %v864_v24 = vsub.f32 1.0, %v863_v23 }
 0xa34   :  { %v865_v25 = vmul.f32 %v1279_v19, %v864_v24 }
 0xa36   :  { %v866_v29 = vadd.f32 %v1279_v19, %v865_v25 }
 0xa38   :  { %v870_v1 = vsel %vm869_vm14, %v1279_v19, %v866_v29 }
 0xa39   :  { %v875_v9 = vsel %vm872_vm15, %v874_v2, %v870_v1 }
 0xa8b   :  { %v881_v26 = vpop.permute.xlu2 %880 }
 0xa8c   :  { %v883_v27 = vadd.f32 %v881_v26, %v877_v11 }
 0xa8e   :  { %1280 = vtanh.f32 %v883_v27 }
 0xa94   :  { %v1281_v3 = vpop.eup %1280 }
 0xa95   :  { %v885_v12 = vmul.f32 %v1281_v3, %v875_v9 }
 0xa97   :  { %887 = vrot.lane.b32.xlu0 %v885_v12, %s1338_s5 }
 0xb09   :  { %v888_v13 = vpop.permute.xlu0 %887 }
 0xb0a   :  { %1182 = vmatmul.msk.f32.vlgmr.msrb.gmra.mxu2 %vm206_vm1, %v888_v13  ;;  %1183 = vmatmul.msk.f32.vlgmr.msrb.gmra.mxu3 %vm206_vm1, %v888_v13 }
 0xb8d   :  { %v908_v5 = vpop.f32.mrf.mxu2  ;;  %v928_v32 = vpop.f32.mrf.mxu3 }
 0xb8e   :  { %v931_v16 = vadd.f32 %v908_v5, %v131_v14  ;;  %v932_v36 = vadd.f32 %v928_v32, %v172_v33 }
 0xb90   :  { %v1184_v17 = vmul.f32 -1.442695, %v931_v16  ;;  %v1185_v41 = vmul.f32 -1.442695, %v932_v36 }
 0xb92   :  { %1282 = vpow2.f32 %v1184_v17 }
 0xb98   :  { %v1283_v20 = vpop.eup %1282 }
 0xb99   :  { %v936_v21 = vadd.f32 1.0, %v1283_v20 }
 0xb9b   :  { %1284 = vrcp.f32 %v936_v21  ;;  %v948_v37 = vand.u32 2147483648, %v936_v21  ;;  %v946_v34 = vand.u32 2147483647, %v936_v21  ;;  %vm942_vm3 = vweird.f32 %v936_v21 }
 0xb9c   :  { %1286 = vtanh.f32 %v932_v36 }
 0xb9d   :  { %v949_v39 = vor.u32 1.1754944e-38, %v948_v37  ;;  %vm947_vm5 = vcmp.eq.f32.partialorder %v946_v34, 8.507059e+37  ;;  %1288 = vpow2.f32 %v1185_v41  ;;  %v1078_v34 = vld [vmem:[%s1786_s6 + $0x10] sm:$0xff]  ;;  %v1197_v41 = vld [vmem:[%s1787_s7] ss:$0 sm:$0xff] }
 0xba1   :  { %v1285_v35 = vpop.eup %1284 }
 0xba2   :  { %v938_v28 = vmul.f32 %v1285_v35, %v936_v21  ;;  %vm943_vm2 = vweird.f32 %v1285_v35  ;;  %v1287_v42 = vpop.eup %1286 }
 0xba3   :  { %vm944_vm4 = vmor %vm942_vm3, %vm943_vm2  ;;  %v1289_v15 = vpop.eup %1288 }
 0xba4   :  { %v939_v31 = vsub.f32 1.0, %v938_v28  ;;  %v956_v45 = vadd.f32 1.0, %v1289_v15 }
 0xba6   :  { %v940_v38 = vmul.f32 %v1285_v35, %v939_v31  ;;  %1290 = vrcp.f32 %v956_v45  ;;  %v968_v54 = vand.u32 2147483648, %v956_v45  ;;  %vm962_vm7 = vweird.f32 %v956_v45 }
 0xba7   :  { %v966_v55 = vand.u32 2147483647, %v956_v45 }
 0xba8   :  { %v941_v6 = vadd.f32 %v1285_v35, %v940_v38  ;;  %v969_v57 = vor.u32 1.1754944e-38, %v968_v54  ;;  %v1079_v38 = vld [vmem:[%s1786_s6 + $0x18] sm:$0xff] }
 0xba9   :  { %vm967_vm9 = vcmp.eq.f32.partialorder %v966_v55, 8.507059e+37  ;;  %1101 = vmatpush.msra.mxu2 %v1079_v38 }
 0xbaa   :  { %v945_v40 = vsel %vm944_vm4, %v1285_v35, %v941_v6  ;;  %v1077_v6 = vld [vmem:[%s1786_s6 + $0x8] sm:$0xff]  ;;  %vm1126_vm4 = vcmask 785408  }
 0xbab   :  { %v950_v43 = vsel %vm947_vm5, %v949_v39, %v945_v40  ;;  %1102 = vmatpush.msra.mxu2 %v1078_v34  ;;  %v1076_v39 = vld [vmem:[%s1786_s6] sm:$0xff] }
 0xbac   :  { %v973_v44 = vmul.f32 %v1287_v42, %v950_v43  ;;  %v1291_v46 = vpop.eup %1290  ;;  %v972_v50 = vmul.f32 %v950_v43, %v883_v27 }
 0xbad   :  { %v958_v47 = vmul.f32 %v1291_v46, %v956_v45  ;;  %vm963_vm6 = vweird.f32 %v1291_v46  ;;  %1103 = vmatpush.msra.mxu2 %v1077_v6 }
 0xbae   :  { %975 = vrot.lane.b32.xlu1 %v973_v44, %s1338_s5  ;;  %vm964_vm8 = vmor %vm962_vm7, %vm963_vm6 }
 0xbaf   :  { %v959_v48 = vsub.f32 1.0, %v958_v47  ;;  %1104 = vmatpush.msra.mxu2 %v1076_v39 }
 0xbb1   :  { %v960_v49 = vmul.f32 %v1291_v46, %v959_v48 }
 0xbb3   :  { %v961_v53 = vadd.f32 %v1291_v46, %v960_v49 }
 0xbb5   :  { %v965_v56 = vsel %vm964_vm8, %v1291_v46, %v961_v53 }
 0xbb6   :  { %v970_v59 = vsel %vm967_vm9, %v969_v57, %v965_v56 }
 0xc20   :  { %v976_v51 = vpop.permute.xlu1 %975 }
 0xc21   :  { %v1741_v52 = vadd.f32 %v976_v51, %v972_v50 }
 0xc23   :  { %1292 = vtanh.f32 %v1741_v52 }
 0xc29   :  { %v1293_v58 = vpop.eup %1292 }
 0xc2a   :  { %v980_v4 = vmul.f32 %v1293_v58, %v970_v59 }
 0xc2c   :  { %982 = vrot.lane.b32.xlu2 %v980_v4, %s1338_s5 }
 0xc34   :  { %1110 = vrot.lane.b32.xlu2 %v980_v4, %s1339_s0 }
 0xc86   :  { %v983_v60 = vpop.permute.xlu2 %982 }
 0xc87   :  { %1186 = vmatmul.msk.f32.vlgmr.msrb.gmra.mxu0 %vm206_vm1, %v983_v60  ;;  %1187 = vmatmul.msk.f32.vlgmr.msrb.gmra.mxu1 %vm206_vm1, %v983_v60 }
 0xc8e   :  { %v1111_v40 = vpop.permute.xlu2 %1110 }
 0xd04   :  { %v1003_v61 = vpop.f32.mrf.mxu0  ;;  %v1023_v7 = vpop.f32.mrf.mxu1 }
 0xd05   :  { %v1026_v62 = vadd.f32 %v1003_v61, %v131_v14  ;;  %v1027_v18 = vadd.f32 %v1023_v7, %v172_v33 }
 0xd07   :  { %v1188_v63 = vmul.f32 -1.442695, %v1026_v62  ;;  %v1189_v2 = vmul.f32 -1.442695, %v1027_v18 }
 0xd09   :  { %1294 = vpow2.f32 %v1188_v63 }
 0xd0f   :  { %v1295_v0 = vpop.eup %1294 }
 0xd10   :  { %v1031_v8 = vadd.f32 1.0, %v1295_v0 }
 0xd12   :  { %1296 = vrcp.f32 %v1031_v8  ;;  %v1043_v24 = vand.u32 2147483648, %v1031_v8  ;;  %v1041_v11 = vand.u32 2147483647, %v1031_v8  ;;  %vm1037_vm11 = vweird.f32 %v1031_v8 }
 0xd13   :  { %1298 = vtanh.f32 %v1027_v18 }
 0xd14   :  { %v1044_v27 = vor.u32 1.1754944e-38, %v1043_v24  ;;  %vm1042_vm13 = vcmp.eq.f32.partialorder %v1041_v11, 8.507059e+37  ;;  %1300 = vpow2.f32 %v1189_v2 }
 0xd18   :  { %v1297_v10 = vpop.eup %1296 }
 0xd19   :  { %v1033_v19 = vmul.f32 %v1297_v10, %v1031_v8  ;;  %vm1038_vm10 = vweird.f32 %v1297_v10  ;;  %v1299_v22 = vpop.eup %1298 }
 0xd1a   :  { %vm1039_vm12 = vmor %vm1037_vm11, %vm1038_vm10  ;;  %v1301_v3 = vpop.eup %1300 }
 0xd1b   :  { %v1034_v23 = vsub.f32 1.0, %v1033_v19  ;;  %v1051_v9 = vadd.f32 1.0, %v1301_v3 }
 0xd1d   :  { %v1035_v25 = vmul.f32 %v1297_v10, %v1034_v23  ;;  %1302 = vrcp.f32 %v1051_v9  ;;  %v1063_v32 = vand.u32 2147483648, %v1051_v9  ;;  %vm1057_vm15 = vweird.f32 %v1051_v9 }
 0xd1e   :  { %v1061_v33 = vand.u32 2147483647, %v1051_v9 }
 0xd1f   :  { %v1036_v26 = vadd.f32 %v1297_v10, %v1035_v25  ;;  %v1064_v36 = vor.u32 1.1754944e-38, %v1063_v32 }
 0xd20   :  { %vm1062_vm3 = vcmp.eq.f32.partialorder %v1061_v33, 8.507059e+37 }
 0xd21   :  { %v1040_v29 = vsel %vm1039_vm12, %v1297_v10, %v1036_v26 }
 0xd22   :  { %v1045_v30 = vsel %vm1042_vm13, %v1044_v27, %v1040_v29 }
 0xd23   :  { %v1068_v1 = vmul.f32 %v1299_v22, %v1045_v30  ;;  %v1303_v12 = vpop.eup %1302  ;;  %v1067_v16 = vmul.f32 %v1045_v30, %v1741_v52 }
 0xd24   :  { %v1053_v13 = vmul.f32 %v1303_v12, %v1051_v9  ;;  %vm1058_vm14 = vweird.f32 %v1303_v12 }
 0xd25   :  { %1070 = vrot.lane.b32.xlu0 %v1068_v1, %s1338_s5  ;;  %vm1059_vm2 = vmor %vm1057_vm15, %vm1058_vm14 }
 0xd26   :  { %v1054_v14 = vsub.f32 1.0, %v1053_v13 }
 0xd28   :  { %v1055_v5 = vmul.f32 %v1303_v12, %v1054_v14 }
 0xd2a   :  { %v1056_v21 = vadd.f32 %v1303_v12, %v1055_v5 }
 0xd2c   :  { %v1060_v35 = vsel %vm1059_vm2, %v1303_v12, %v1056_v21 }
 0xd2d   :  { %v1065_v31 = vsel %vm1062_vm3, %v1064_v36, %v1060_v35 }
 0xd97   :  { %v1071_v17 = vpop.permute.xlu0 %1070 }
 0xd98   :  { %v1073_v20 = vadd.f32 %v1071_v17, %v1067_v16 }
 0xd9a   :  { %1304 = vtanh.f32 %v1073_v20  ;;  %1121 = vrot.lane.b32.xlu2 %v1073_v20, %s1337_s14 }
 0xda0   :  { %v1305_v28 = vpop.eup %1304 }
 0xda1   :  { %v1075_v37 = vmul.f32 %v1305_v28, %v1065_v31 }
 0xda3   :  { %1113 = vrot.lane.b32.xlu0 %v1075_v37, %s1339_s0  ;;  %1085 = vrot.lane.b32.xlu1 %v1075_v37, %s1337_s14 }
 0xdab   :  { %1117 = vrot.lane.b32.xlu1 %v1741_v52, %s1337_s14 }
 0xdf4   :  { %v1122_v42 = vpop.permute.xlu2 %1121 }
 0xdf5   :  { %v1128_v43 = vsel %vm67_vm0, %v1122_v42, 0.0 }
 0xdf6   :  { %1130 = vst [vmem:[%s1788_s8 + $0x8] sm:$0xff] %v1128_v43 }
 0xe15   :  { %v1086_v44 = vpop.permute.xlu1 %1085  ;;  %v1114_v47 = vpop.permute.xlu0 %1113 }
 0xe16   :  { %1190 = vmatmul.msk.f32.vlgmr.msra.gmra.mxu2 %vm67_vm0, %v1086_v44 }
 0xe1d   :  { %v1118_v49 = vpop.permute.xlu1 %1117 }
 0xe99   :  { %v1106_v15 = vpop.f32.mrf.mxu2 }
 0xe9a   :  { %v1107_v45 = vadd.f32 %v1197_v41, %v1106_v15 }
 0xe9c   :  { %1306 = vtanh.f32 %v1107_v45 }
 0xea2   :  { %v1307_v46 = vpop.eup %1306 }
 0xea3   :  { %v1124_v48 = vsel %vm67_vm0, %v1307_v46, %v1111_v40 }
 0xea4   :  { %v1125_v50 = vsel %vm206_vm1, %v1124_v48, %v1114_v47 }
 0xea5   :  { %v1127_v51 = vsel %vm1126_vm4, %v1125_v50, %v1118_v49 }
 0xea6   :  { %1129 = vst [vmem:[%s1788_s8] sm:$0xff] %v1127_v51 }
 0xea7   :  { %1135 = vsyncpa [#allocation3], 1 }

</bundles_post_ra>
